<compile_context>
chip_gen: v7x
topology: tpu7x:2x2x1
jax: 0.10.0
libtpu: 0.0.40
codegen_flags: <defaults>
</compile_context>

<pallas_src>
import math
import functools

import jax
import jax.numpy as jnp
from jax.experimental import pallas as pl
from jax.experimental.pallas import tpu as pltpu


# --------------------------------------------------------------------------
# Kernel
# --------------------------------------------------------------------------
def lstm_kernel(x_ref, wih0_ref, b0_ref, b1_ref, b2_ref,
                wbelow_ref, wsame_ref,
                wfc1_ref, bfc1_ref, wfc2m_ref, bfc2m_ref,
                out_ref, h2_scr, *, T, B):
    H = wsame_ref.shape[0]
    f32 = jnp.float32
    bf16 = jnp.bfloat16
    B3 = 3 * B

    # ---- prologue: everything hoisted out of the wave loop ------------------
    # Layer-0 input contribution (input_size == 1 -> rank-1 broadcast multiply),
    # b0 folded in.  i/f/o columns were pre-scaled by 0.5 at pack time
    # (sigmoid-via-tanh).  Shape (T*B, 4H), f32.
    xg = x_ref[...] * wih0_ref[...] + b0_ref[...]

    # Per-wave additive slab: rows 0:B = xg[t] (layer 0), B:2B = b1, 2B:3B = b2.
    addend = jnp.concatenate(
        [xg.reshape(T, B, 4 * H),
         jnp.broadcast_to(b1_ref[...][None], (T, B, 4 * H)),
         jnp.broadcast_to(b2_ref[...][None], (T, B, 4 * H))],
        axis=1)                                            # (T, 3B, 4H) f32

    w_below = wbelow_ref[...]                              # (H, 12H) bf16
    w_same = wsame_ref[...]                                # (H, 12H) bf16

    # Hoisted row-block masks (no broadcast_in_dim inside the loop).
    row_g = jax.lax.broadcasted_iota(jnp.int32, (B3, 4 * H), 0)
    is_l0_g = row_g < B
    is_l01_g = row_g < 2 * B
    row_h = jax.lax.broadcasted_iota(jnp.int32, (B3, H), 0)
    is_l0_h = row_h < B
    is_l01_h = row_h < 2 * B

    zeros_bf = jnp.zeros((B, H), bf16)
    h_all = jnp.zeros((B3, H), f32)     # stacked state rows: [h0; h1; h2]
    c_all = jnp.zeros((B3, H), f32)

    # ---- wavefront recurrence -----------------------------------------------
    # Wave w computes layer0@t=w, layer1@t=w-1, layer2@t=w-2 simultaneously.
    # All inputs of a wave come from the previous wave's state snapshot.
    for w in range(T + 2):
        t0 = min(w, T - 1)              # x index for layer 0 (clamped; rows unused when w>=T)

        lhs_same = h_all.astype(bf16)                      # (3B, H)
        # "below-layer" inputs: layer1 <- h0, layer2 <- h1 (shift down by B rows);
        # layer0 rows are zero (its x-term lives in `addend`).
        lhs_below = jnp.concatenate([zeros_bf, lhs_same[:2 * B]], axis=0)

        # Two independent MXU pushes, summed (accumulates in the MRB on v7x).
        g_full = (jnp.dot(lhs_below, w_below, preferred_element_type=f32)
                  + jnp.dot(lhs_same, w_same, preferred_element_type=f32))

        # Diagonal block extraction: the 3 lane groups (0:4H, 4H:8H, 8H:12H) are
        # whole vregs; selection by row block is 2 VPU selects, no data movement.
        p0 = g_full[:, 0:4 * H]
        p1 = g_full[:, 4 * H:8 * H]
        p2 = g_full[:, 8 * H:12 * H]
        gates = jnp.where(is_l0_g, p0, jnp.where(is_l01_g, p1, p2))
        gates = gates + addend[t0]                         # (3B, 4H)

        # Fused LSTM cell over all 3 layers: 2 EUP launches per wave.
        # Gate order (i, f, o, g); i/f/o pre-activations already halved, so
        # sigmoid(z) = 0.5 * (1 + tanh(z/2)) is one tanh + cheap VPU fixup.
        t_act = jnp.tanh(gates)
        ifo = 0.5 * t_act[:, :3 * H] + 0.5
        i_g = ifo[:, :H]
        f_g = ifo[:, H:2 * H]
        o_g = ifo[:, 2 * H:3 * H]
        g_g = t_act[:, 3 * H:]
        c_new = f_g * c_all + i_g * g_g
        h_new = o_g * jnp.tanh(c_new)

        # Boundary handling: layer1 output invalid at w=0, layer2 invalid at w<2
        # (keep the zero initial state for those rows).  Tail waves need no
        # masking: stale layer-0/1 rows never reach a stored layer-2 output.
        if w == 0:
            h_all = jnp.where(is_l0_h, h_new, h_all)
            c_all = jnp.where(is_l0_h, c_new, c_all)
        elif w == 1:
            h_all = jnp.where(is_l01_h, h_new, h_all)
            c_all = jnp.where(is_l01_h, c_new, c_all)
        else:
            h_all = h_new
            c_all = c_new
            t2 = w - 2                  # layer-2 timestep produced this wave
            h2_scr[t2 * B:(t2 + 1) * B, :] = h_new[2 * B:, :]

    # ---- head: batched over all timesteps (no time dependence) --------------
    h2_all = h2_scr[...]                                   # (T*B, H)
    y = jnp.dot(h2_all.astype(bf16), wfc1_ref[...],
                preferred_element_type=f32) + bfc1_ref[...]
    y = jnp.where(y >= 0, y, 0.01 * y)                     # LeakyReLU(0.01)
    # fc2 + mean folded: mean_o(y @ W2^T + b2) == y @ mean_o(W2) + mean(b2)
    out = jnp.sum(y * wfc2m_ref[...], axis=-1, keepdims=True) + bfc2m_ref[...]
    out_ref[...] = out                                     # one store, (T*B, 1)


# --------------------------------------------------------------------------
# Parameters (PyTorch-style layout + init)
# --------------------------------------------------------------------------
def make_params(key, hidden, num_output):
    """PyTorch-layout parameters with PyTorch-style uniform init.
    LSTM per layer: w_ih (4H, in), w_hh (4H, H), b = b_ih + b_hh (4H,),
    gate order (i, f, g, o).  fc1: (H, H)/(H,), fc2: (O, H)/(O,)."""
    H, O = hidden, num_output
    ks = iter(jax.random.split(key, 20))

    def u(k, shape, bound):
        return jax.random.uniform(k, shape, jnp.float32, -bound, bound)

    bl = 1.0 / math.sqrt(H)
    p = {}
    in_sizes = (1, H, H)
    for layer in range(3):
        p[f"w_ih{layer}"] = u(next(ks), (4 * H, in_sizes[layer]), bl)
        p[f"w_hh{layer}"] = u(next(ks), (4 * H, H), bl)
        p[f"b{layer}"] = u(next(ks), (4 * H,), bl) + u(next(ks), (4 * H,), bl)
    p["w_fc1"] = u(next(ks), (H, H), bl)
    p["b_fc1"] = u(next(ks), (H,), bl)
    p["w_fc2"] = u(next(ks), (O, H), bl)
    p["b_fc2"] = u(next(ks), (O,), bl)
    return p


# --------------------------------------------------------------------------
# One-time kernel-format packing (called ONCE, outside the per-call path)
# --------------------------------------------------------------------------
def _gate_scale(H):
    # i/f/o columns halved (sigmoid-via-tanh); g columns unscaled.
    return jnp.concatenate([jnp.full((3 * H,), 0.5, jnp.float32),
                            jnp.ones((H,), jnp.float32)])


def _pack_gate_mat(w, H):
    """(4H, in) PyTorch (i,f,g,o) -> (in, 4H) kernel (i,f,o,g), i/f/o cols * 0.5."""
    w = jnp.concatenate([w[:2 * H], w[3 * H:], w[2 * H:3 * H]], axis=0).T
    return w * _gate_scale(H)[None, :]


def _pack_gate_vec(b, H):
    b = jnp.concatenate([b[:2 * H], b[3 * H:], b[2 * H:3 * H]], axis=0)
    return (b * _gate_scale(H))[None, :]                   # (1, 4H)


def prepare_kernel_params(p, hidden):
    """Pack PyTorch-layout params once: transpose, gate reorder+scale, layer
    fusion into 12H-wide 'same'/'below' weights, fc2+mean fold, bf16 MXU cast."""
    H = hidden
    bf16 = jnp.bfloat16
    kp = {}
    kp["wih0_row"] = _pack_gate_mat(p["w_ih0"], H)         # (1, 4H)  f32 (VPU path)
    kp["b0"] = _pack_gate_vec(p["b0"], H)                  # (1, 4H)  f32
    kp["b1"] = _pack_gate_vec(p["b1"], H)
    kp["b2"] = _pack_gate_vec(p["b2"], H)

    whh0 = _pack_gate_mat(p["w_hh0"], H)                   # (H, 4H)
    wih1 = _pack_gate_mat(p["w_ih1"], H)
    whh1 = _pack_gate_mat(p["w_hh1"], H)
    wih2 = _pack_gate_mat(p["w_ih2"], H)
    whh2 = _pack_gate_mat(p["w_hh2"], H)
    # Column-concatenated per-layer weights (block-diagonal use via lane selects).
    kp["w_same"] = jnp.concatenate([whh0, whh1, whh2], axis=1).astype(bf16)   # (H, 12H)
    kp["w_below"] = jnp.concatenate(
        [jnp.zeros((H, 4 * H), jnp.float32), wih1, wih2], axis=1).astype(bf16)

    kp["w_fc1"] = p["w_fc1"].T.astype(bf16)                # (H, H)
    kp["b_fc1"] = p["b_fc1"][None, :]                      # (1, H)  f32
    kp["w_fc2m"] = jnp.mean(p["w_fc2"], axis=0)[None, :]   # (1, H)  f32
    kp["b_fc2m"] = jnp.mean(p["b_fc2"])[None, None]        # (1, 1)  f32
    return kp


# --------------------------------------------------------------------------
# Wrapper
# --------------------------------------------------------------------------
@jax.jit
def lstm_forward(x, kp):
    T, B, _ = x.shape
    H = kp["w_same"].shape[0]
    x_flat = x.reshape(T * B, 1)

    def _full(shape):
        n = len(shape)
        return pl.BlockSpec(shape, lambda i, n=n: (0,) * n)

    grid_spec = pltpu.PrefetchScalarGridSpec(
        num_scalar_prefetch=0,
        grid=(1,),                                  # single step: no per-step overhead
        in_specs=[
            _full((T * B, 1)),                      # x (lane-dense slab)
            _full((1, 4 * H)), _full((1, 4 * H)),   # wih0_row, b0
            _full((1, 4 * H)), _full((1, 4 * H)),   # b1, b2
            _full((H, 12 * H)), _full((H, 12 * H)),  # w_below, w_same
            _full((H, H)), _full((1, H)),           # fc1
            _full((1, H)), _full((1, 1)),           # folded fc2 + mean
        ],
        out_specs=_full((T * B, 1)),
        scratch_shapes=[pltpu.VMEM((T * B, H), jnp.float32)],   # per-step h2 slab
    )

    out_flat = pl.pallas_call(
        functools.partial(lstm_kernel, T=T, B=B),
        out_shape=jax.ShapeDtypeStruct((T * B, 1), jnp.float32),
        grid_spec=grid_spec,
        compiler_params=pltpu.CompilerParams(
            dimension_semantics=("arbitrary",),     # serial recurrence
        ),
    )(
        x_flat,
        kp["wih0_row"], kp["b0"], kp["b1"], kp["b2"],
        kp["w_below"], kp["w_same"],
        kp["w_fc1"], kp["b_fc1"], kp["w_fc2m"], kp["b_fc2m"],
    )
    membrane = out_flat.reshape(T, B, 1)
    return {"membrane_potential": membrane, "spk_23": jnp.asarray(1.0)}


# --------------------------------------------------------------------------
# Pure-JAX reference (f32, PyTorch semantics) for correctness checking
# --------------------------------------------------------------------------
def lstm_reference(x, p, hidden):
    T, B, _ = x.shape
    H = hidden

    def cell(carry, x_t):
        hs, cs = carry
        inp = x_t
        new_h, new_c = [], []
        for l in range(3):
            gates = (inp @ p[f"w_ih{l}"].T + hs[l] @ p[f"w_hh{l}"].T
                     + p[f"b{l}"])
            i_g = jax.nn.sigmoid(gates[:, :H])
            f_g = jax.nn.sigmoid(gates[:, H:2 * H])
            g_g = jnp.tanh(gates[:, 2 * H:3 * H])
            o_g = jax.nn.sigmoid(gates[:, 3 * H:])
            c = f_g * cs[l] + i_g * g_g
            h = o_g * jnp.tanh(c)
            new_h.append(h)
            new_c.append(c)
            inp = h
        y = inp @ p["w_fc1"].T + p["b_fc1"]
        y = jnp.where(y >= 0, y, 0.01 * y)
        y = y @ p["w_fc2"].T + p["b_fc2"]
        out = jnp.mean(y, axis=-1, keepdims=True)
        return (jnp.stack(new_h), jnp.stack(new_c)), out

    init = (jnp.zeros((3, B, H), jnp.float32),
            jnp.zeros((3, B, H), jnp.float32))
    _, outs = jax.lax.scan(cell, init, x)
    return outs  # (T, B, 1)


if __name__ == "__main__":
    TIMESTEPS, BATCH, HIDDEN, NUM_OUTPUT = 8, 2, 32, 4

    key = jax.random.PRNGKey(0)
    k_param, k_x = jax.random.split(key)
    params = make_params(k_param, HIDDEN, NUM_OUTPUT)
    # Pack weights ONCE (hoisted out of the per-call path per perf review).
    kernel_params = prepare_kernel_params(params, HIDDEN)
    x = jax.random.normal(k_x, (TIMESTEPS, BATCH, 1), jnp.float32)

    out = lstm_forward(x, kernel_params)
    mem = jax.block_until_ready(out["membrane_potential"])
    assert mem.shape == (TIMESTEPS, BATCH, 1)
    assert float(out["spk_23"]) == 1.0

    ref = lstm_reference(x, params, HIDDEN)
    max_err = float(jnp.max(jnp.abs(mem - ref)))
    # bf16 MXU operands (f32 accumulate) + tanh-form sigmoid: ~1e-3-level deviations.
    assert max_err < 2e-2, f"mismatch vs reference: {max_err}"

    print("KERNEL_OK")
</pallas_src>

<mosaic_0001>
module attributes {stable_mosaic.version = 11 : i64} {
  func.func @lstm_kernel(%arg0: i32, %arg1: memref<16x1xf32, #tpu.memory_space<vmem>>, %arg2: memref<1x128xf32, #tpu.memory_space<vmem>>, %arg3: memref<1x128xf32, #tpu.memory_space<vmem>>, %arg4: memref<1x128xf32, #tpu.memory_space<vmem>>, %arg5: memref<1x128xf32, #tpu.memory_space<vmem>>, %arg6: memref<32x384xbf16, #tpu.memory_space<vmem>>, %arg7: memref<32x384xbf16, #tpu.memory_space<vmem>>, %arg8: memref<32x32xbf16, #tpu.memory_space<vmem>>, %arg9: memref<1x32xf32, #tpu.memory_space<vmem>>, %arg10: memref<1x32xf32, #tpu.memory_space<vmem>>, %arg11: memref<1x1xf32, #tpu.memory_space<vmem>>, %arg12: memref<16x1xf32, #tpu.memory_space<vmem>>, %arg13: memref<16x32xf32, #tpu.memory_space<vmem>>) attributes {dimension_semantics = [#tpu.dimension_semantics<arbitrary>], iteration_bounds = array<i64: 1>, scalar_prefetch = 0 : i64, scratch_operands = 1 : i64, tpu.core_type = #tpu.core_type<tc>, window_params = [{pipeline_mode = #tpu.pipeline_mode<synchronous>, transform_indices = @transform_0, window_bounds = array<i64: 16, 1>}, {pipeline_mode = #tpu.pipeline_mode<synchronous>, transform_indices = @transform_1, window_bounds = array<i64: 1, 128>}, {pipeline_mode = #tpu.pipeline_mode<synchronous>, transform_indices = @transform_2, window_bounds = array<i64: 1, 128>}, {pipeline_mode = #tpu.pipeline_mode<synchronous>, transform_indices = @transform_3, window_bounds = array<i64: 1, 128>}, {pipeline_mode = #tpu.pipeline_mode<synchronous>, transform_indices = @transform_4, window_bounds = array<i64: 1, 128>}, {pipeline_mode = #tpu.pipeline_mode<synchronous>, transform_indices = @transform_5, window_bounds = array<i64: 32, 384>}, {pipeline_mode = #tpu.pipeline_mode<synchronous>, transform_indices = @transform_6, window_bounds = array<i64: 32, 384>}, {pipeline_mode = #tpu.pipeline_mode<synchronous>, transform_indices = @transform_7, window_bounds = array<i64: 32, 32>}, {pipeline_mode = #tpu.pipeline_mode<synchronous>, transform_indices = @transform_8, window_bounds = array<i64: 1, 32>}, {pipeline_mode = #tpu.pipeline_mode<synchronous>, transform_indices = @transform_9, window_bounds = array<i64: 1, 32>}, {pipeline_mode = #tpu.pipeline_mode<synchronous>, transform_indices = @transform_10, window_bounds = array<i64: 1, 1>}, {pipeline_mode = #tpu.pipeline_mode<synchronous>, transform_indices = @transform_11, window_bounds = array<i64: 16, 1>}]} {
    %c0 = arith.constant 0 : index
    %c0_0 = arith.constant 0 : index
    %0 = vector.load %arg1[%c0, %c0_0] : memref<16x1xf32, #tpu.memory_space<vmem>>, vector<16x1xf32>
    %c0_1 = arith.constant 0 : index
    %c0_2 = arith.constant 0 : index
    %1 = vector.load %arg2[%c0_1, %c0_2] : memref<1x128xf32, #tpu.memory_space<vmem>>, vector<1x128xf32>
    %2 = vector.broadcast %0 : vector<16x1xf32> to vector<16x128xf32>
    %3 = vector.broadcast %1 : vector<1x128xf32> to vector<16x128xf32>
    %4 = arith.mulf %2, %3 : vector<16x128xf32>
    %c0_3 = arith.constant 0 : index
    %c0_4 = arith.constant 0 : index
    %5 = vector.load %arg3[%c0_3, %c0_4] : memref<1x128xf32, #tpu.memory_space<vmem>>, vector<1x128xf32>
    %6 = vector.broadcast %5 : vector<1x128xf32> to vector<16x128xf32>
    %7 = arith.addf %4, %6 : vector<16x128xf32>
    %8 = vector.shape_cast %7 : vector<16x128xf32> to vector<8x2x128xf32>
    %c0_5 = arith.constant 0 : index
    %c0_6 = arith.constant 0 : index
    %9 = vector.load %arg4[%c0_5, %c0_6] : memref<1x128xf32, #tpu.memory_space<vmem>>, vector<1x128xf32>
    %10 = vector.shape_cast %9 : vector<1x128xf32> to vector<1x1x128xf32>
    %11 = vector.shape_cast %10 : vector<1x1x128xf32> to vector<1x1x128xf32>
    %12 = vector.broadcast %11 : vector<1x1x128xf32> to vector<8x2x128xf32>
    %c0_7 = arith.constant 0 : index
    %c0_8 = arith.constant 0 : index
    %13 = vector.load %arg5[%c0_7, %c0_8] : memref<1x128xf32, #tpu.memory_space<vmem>>, vector<1x128xf32>
    %14 = vector.shape_cast %13 : vector<1x128xf32> to vector<1x1x128xf32>
    %15 = vector.shape_cast %14 : vector<1x1x128xf32> to vector<1x1x128xf32>
    %16 = vector.broadcast %15 : vector<1x1x128xf32> to vector<8x2x128xf32>
    %17 = tpu.concatenate %8, %12, %16 in 1 : vector<8x2x128xf32>, vector<8x2x128xf32>, vector<8x2x128xf32> -> vector<8x6x128xf32>
    %c0_9 = arith.constant 0 : index
    %c0_10 = arith.constant 0 : index
    %18 = vector.load %arg6[%c0_9, %c0_10] : memref<32x384xbf16, #tpu.memory_space<vmem>>, vector<32x384xbf16>
    %c0_11 = arith.constant 0 : index
    %c0_12 = arith.constant 0 : index
    %19 = vector.load %arg7[%c0_11, %c0_12] : memref<32x384xbf16, #tpu.memory_space<vmem>>, vector<32x384xbf16>
    %20 = tpu.iota {dimensions = array<i32: 0>} : vector<6x128xi32>
    %c2_i32 = arith.constant 2 : i32
    %21 = vector.broadcast %c2_i32 : i32 to vector<6x128xi32>
    %22 = arith.cmpi slt, %20, %21 : vector<6x128xi32>
    %c4_i32 = arith.constant 4 : i32
    %23 = vector.broadcast %c4_i32 : i32 to vector<6x128xi32>
    %24 = arith.cmpi slt, %20, %23 : vector<6x128xi32>
    %25 = tpu.iota {dimensions = array<i32: 0>} : vector<6x32xi32>
    %c2_i32_13 = arith.constant 2 : i32
    %26 = vector.broadcast %c2_i32_13 : i32 to vector<6x32xi32>
    %27 = arith.cmpi slt, %25, %26 : vector<6x32xi32>
    %c4_i32_14 = arith.constant 4 : i32
    %28 = vector.broadcast %c4_i32_14 : i32 to vector<6x32xi32>
    %29 = arith.cmpi slt, %25, %28 : vector<6x32xi32>
    %cst = arith.constant 0.000000e+00 : bf16
    %30 = vector.broadcast %cst : bf16 to vector<2x32xbf16>
    %cst_15 = arith.constant 0.000000e+00 : f32
    %31 = vector.broadcast %cst_15 : f32 to vector<6x32xf32>
    %cst_16 = arith.constant 0.000000e+00 : f32
    %32 = vector.broadcast %cst_16 : f32 to vector<6x32xf32>
    %33 = arith.truncf %31 : vector<6x32xf32> to vector<6x32xbf16>
    %34 = vector.extract_strided_slice %33 {offsets = [0, 0], sizes = [4, 32], strides = [1, 1]} : vector<6x32xbf16> to vector<4x32xbf16>
    %35 = tpu.concatenate %30, %34 in 0 : vector<2x32xbf16>, vector<4x32xbf16> -> vector<6x32xbf16>
    %cst_17 = arith.constant dense<0.000000e+00> : vector<6x384xf32>
    %36 = tpu.matmul %35, %18, %cst_17 {dimension_numbers = #tpu.dot_dimension_numbers<[1], [0], [0], [1], [0, 0, 1, 1], [], []>} : vector<6x32xbf16>, vector<32x384xbf16>, vector<6x384xf32> -> vector<6x384xf32>
    %cst_18 = arith.constant dense<0.000000e+00> : vector<6x384xf32>
    %37 = tpu.matmul %33, %19, %cst_18 {dimension_numbers = #tpu.dot_dimension_numbers<[1], [0], [0], [1], [0, 0, 1, 1], [], []>} : vector<6x32xbf16>, vector<32x384xbf16>, vector<6x384xf32> -> vector<6x384xf32>
    %38 = arith.addf %36, %37 : vector<6x384xf32>
    %39 = vector.extract_strided_slice %38 {offsets = [0, 0], sizes = [6, 128], strides = [1, 1]} : vector<6x384xf32> to vector<6x128xf32>
    %40 = vector.extract_strided_slice %38 {offsets = [0, 128], sizes = [6, 128], strides = [1, 1]} : vector<6x384xf32> to vector<6x128xf32>
    %41 = vector.extract_strided_slice %38 {offsets = [0, 256], sizes = [6, 128], strides = [1, 1]} : vector<6x384xf32> to vector<6x128xf32>
    %42 = arith.select %24, %40, %41 : vector<6x128xi1>, vector<6x128xf32>
    %43 = arith.select %22, %39, %42 : vector<6x128xi1>, vector<6x128xf32>
    %44 = vector.extract_strided_slice %17 {offsets = [0, 0, 0], sizes = [1, 6, 128], strides = [1, 1, 1]} : vector<8x6x128xf32> to vector<1x6x128xf32>
    %45 = vector.shape_cast %44 : vector<1x6x128xf32> to vector<6x128xf32>
    %46 = arith.addf %43, %45 : vector<6x128xf32>
    %47 = math.tanh %46 : vector<6x128xf32>
    %48 = vector.extract_strided_slice %47 {offsets = [0, 0], sizes = [6, 96], strides = [1, 1]} : vector<6x128xf32> to vector<6x96xf32>
    %cst_19 = arith.constant 5.000000e-01 : f32
    %49 = vector.broadcast %cst_19 : f32 to vector<6x96xf32>
    %50 = arith.mulf %49, %48 : vector<6x96xf32>
    %cst_20 = arith.constant 5.000000e-01 : f32
    %51 = vector.broadcast %cst_20 : f32 to vector<6x96xf32>
    %52 = arith.addf %50, %51 : vector<6x96xf32>
    %53 = vector.extract_strided_slice %52 {offsets = [0, 0], sizes = [6, 32], strides = [1, 1]} : vector<6x96xf32> to vector<6x32xf32>
    %54 = vector.extract_strided_slice %52 {offsets = [0, 32], sizes = [6, 32], strides = [1, 1]} : vector<6x96xf32> to vector<6x32xf32>
    %55 = vector.extract_strided_slice %52 {offsets = [0, 64], sizes = [6, 32], strides = [1, 1]} : vector<6x96xf32> to vector<6x32xf32>
    %56 = vector.extract_strided_slice %47 {offsets = [0, 96], sizes = [6, 32], strides = [1, 1]} : vector<6x128xf32> to vector<6x32xf32>
    %57 = arith.mulf %54, %32 : vector<6x32xf32>
    %58 = arith.mulf %53, %56 : vector<6x32xf32>
    %59 = arith.addf %57, %58 : vector<6x32xf32>
    %60 = math.tanh %59 : vector<6x32xf32>
    %61 = arith.mulf %55, %60 : vector<6x32xf32>
    %62 = arith.select %27, %61, %31 : vector<6x32xi1>, vector<6x32xf32>
    %63 = arith.select %27, %59, %32 : vector<6x32xi1>, vector<6x32xf32>
    %64 = arith.truncf %62 : vector<6x32xf32> to vector<6x32xbf16>
    %65 = vector.extract_strided_slice %64 {offsets = [0, 0], sizes = [4, 32], strides = [1, 1]} : vector<6x32xbf16> to vector<4x32xbf16>
    %66 = tpu.concatenate %30, %65 in 0 : vector<2x32xbf16>, vector<4x32xbf16> -> vector<6x32xbf16>
    %cst_21 = arith.constant dense<0.000000e+00> : vector<6x384xf32>
    %67 = tpu.matmul %66, %18, %cst_21 {dimension_numbers = #tpu.dot_dimension_numbers<[1], [0], [0], [1], [0, 0, 1, 1], [], []>} : vector<6x32xbf16>, vector<32x384xbf16>, vector<6x384xf32> -> vector<6x384xf32>
    %cst_22 = arith.constant dense<0.000000e+00> : vector<6x384xf32>
    %68 = tpu.matmul %64, %19, %cst_22 {dimension_numbers = #tpu.dot_dimension_numbers<[1], [0], [0], [1], [0, 0, 1, 1], [], []>} : vector<6x32xbf16>, vector<32x384xbf16>, vector<6x384xf32> -> vector<6x384xf32>
    %69 = arith.addf %67, %68 : vector<6x384xf32>
    %70 = vector.extract_strided_slice %69 {offsets = [0, 0], sizes = [6, 128], strides = [1, 1]} : vector<6x384xf32> to vector<6x128xf32>
    %71 = vector.extract_strided_slice %69 {offsets = [0, 128], sizes = [6, 128], strides = [1, 1]} : vector<6x384xf32> to vector<6x128xf32>
    %72 = vector.extract_strided_slice %69 {offsets = [0, 256], sizes = [6, 128], strides = [1, 1]} : vector<6x384xf32> to vector<6x128xf32>
    %73 = arith.select %24, %71, %72 : vector<6x128xi1>, vector<6x128xf32>
    %74 = arith.select %22, %70, %73 : vector<6x128xi1>, vector<6x128xf32>
    %75 = vector.extract_strided_slice %17 {offsets = [1, 0, 0], sizes = [1, 6, 128], strides = [1, 1, 1]} : vector<8x6x128xf32> to vector<1x6x128xf32>
    %76 = vector.shape_cast %75 : vector<1x6x128xf32> to vector<6x128xf32>
    %77 = arith.addf %74, %76 : vector<6x128xf32>
    %78 = math.tanh %77 : vector<6x128xf32>
    %79 = vector.extract_strided_slice %78 {offsets = [0, 0], sizes = [6, 96], strides = [1, 1]} : vector<6x128xf32> to vector<6x96xf32>
    %cst_23 = arith.constant 5.000000e-01 : f32
    %80 = vector.broadcast %cst_23 : f32 to vector<6x96xf32>
    %81 = arith.mulf %80, %79 : vector<6x96xf32>
    %cst_24 = arith.constant 5.000000e-01 : f32
    %82 = vector.broadcast %cst_24 : f32 to vector<6x96xf32>
    %83 = arith.addf %81, %82 : vector<6x96xf32>
    %84 = vector.extract_strided_slice %83 {offsets = [0, 0], sizes = [6, 32], strides = [1, 1]} : vector<6x96xf32> to vector<6x32xf32>
    %85 = vector.extract_strided_slice %83 {offsets = [0, 32], sizes = [6, 32], strides = [1, 1]} : vector<6x96xf32> to vector<6x32xf32>
    %86 = vector.extract_strided_slice %83 {offsets = [0, 64], sizes = [6, 32], strides = [1, 1]} : vector<6x96xf32> to vector<6x32xf32>
    %87 = vector.extract_strided_slice %78 {offsets = [0, 96], sizes = [6, 32], strides = [1, 1]} : vector<6x128xf32> to vector<6x32xf32>
    %88 = arith.mulf %85, %63 : vector<6x32xf32>
    %89 = arith.mulf %84, %87 : vector<6x32xf32>
    %90 = arith.addf %88, %89 : vector<6x32xf32>
    %91 = math.tanh %90 : vector<6x32xf32>
    %92 = arith.mulf %86, %91 : vector<6x32xf32>
    %93 = arith.select %29, %92, %62 : vector<6x32xi1>, vector<6x32xf32>
    %94 = arith.select %29, %90, %63 : vector<6x32xi1>, vector<6x32xf32>
    %95 = arith.truncf %93 : vector<6x32xf32> to vector<6x32xbf16>
    %96 = vector.extract_strided_slice %95 {offsets = [0, 0], sizes = [4, 32], strides = [1, 1]} : vector<6x32xbf16> to vector<4x32xbf16>
    %97 = tpu.concatenate %30, %96 in 0 : vector<2x32xbf16>, vector<4x32xbf16> -> vector<6x32xbf16>
    %cst_25 = arith.constant dense<0.000000e+00> : vector<6x384xf32>
    %98 = tpu.matmul %97, %18, %cst_25 {dimension_numbers = #tpu.dot_dimension_numbers<[1], [0], [0], [1], [0, 0, 1, 1], [], []>} : vector<6x32xbf16>, vector<32x384xbf16>, vector<6x384xf32> -> vector<6x384xf32>
    %cst_26 = arith.constant dense<0.000000e+00> : vector<6x384xf32>
    %99 = tpu.matmul %95, %19, %cst_26 {dimension_numbers = #tpu.dot_dimension_numbers<[1], [0], [0], [1], [0, 0, 1, 1], [], []>} : vector<6x32xbf16>, vector<32x384xbf16>, vector<6x384xf32> -> vector<6x384xf32>
    %100 = arith.addf %98, %99 : vector<6x384xf32>
    %101 = vector.extract_strided_slice %100 {offsets = [0, 0], sizes = [6, 128], strides = [1, 1]} : vector<6x384xf32> to vector<6x128xf32>
    %102 = vector.extract_strided_slice %100 {offsets = [0, 128], sizes = [6, 128], strides = [1, 1]} : vector<6x384xf32> to vector<6x128xf32>
    %103 = vector.extract_strided_slice %100 {offsets = [0, 256], sizes = [6, 128], strides = [1, 1]} : vector<6x384xf32> to vector<6x128xf32>
    %104 = arith.select %24, %102, %103 : vector<6x128xi1>, vector<6x128xf32>
    %105 = arith.select %22, %101, %104 : vector<6x128xi1>, vector<6x128xf32>
    %106 = vector.extract_strided_slice %17 {offsets = [2, 0, 0], sizes = [1, 6, 128], strides = [1, 1, 1]} : vector<8x6x128xf32> to vector<1x6x128xf32>
    %107 = vector.shape_cast %106 : vector<1x6x128xf32> to vector<6x128xf32>
    %108 = arith.addf %105, %107 : vector<6x128xf32>
    %109 = math.tanh %108 : vector<6x128xf32>
    %110 = vector.extract_strided_slice %109 {offsets = [0, 0], sizes = [6, 96], strides = [1, 1]} : vector<6x128xf32> to vector<6x96xf32>
    %cst_27 = arith.constant 5.000000e-01 : f32
    %111 = vector.broadcast %cst_27 : f32 to vector<6x96xf32>
    %112 = arith.mulf %111, %110 : vector<6x96xf32>
    %cst_28 = arith.constant 5.000000e-01 : f32
    %113 = vector.broadcast %cst_28 : f32 to vector<6x96xf32>
    %114 = arith.addf %112, %113 : vector<6x96xf32>
    %115 = vector.extract_strided_slice %114 {offsets = [0, 0], sizes = [6, 32], strides = [1, 1]} : vector<6x96xf32> to vector<6x32xf32>
    %116 = vector.extract_strided_slice %114 {offsets = [0, 32], sizes = [6, 32], strides = [1, 1]} : vector<6x96xf32> to vector<6x32xf32>
    %117 = vector.extract_strided_slice %114 {offsets = [0, 64], sizes = [6, 32], strides = [1, 1]} : vector<6x96xf32> to vector<6x32xf32>
    %118 = vector.extract_strided_slice %109 {offsets = [0, 96], sizes = [6, 32], strides = [1, 1]} : vector<6x128xf32> to vector<6x32xf32>
    %119 = arith.mulf %116, %94 : vector<6x32xf32>
    %120 = arith.mulf %115, %118 : vector<6x32xf32>
    %121 = arith.addf %119, %120 : vector<6x32xf32>
    %122 = math.tanh %121 : vector<6x32xf32>
    %123 = arith.mulf %117, %122 : vector<6x32xf32>
    %124 = vector.extract_strided_slice %123 {offsets = [4, 0], sizes = [2, 32], strides = [1, 1]} : vector<6x32xf32> to vector<2x32xf32>
    %c0_29 = arith.constant 0 : index
    %c0_30 = arith.constant 0 : index
    %125 = vector.load %arg13[%c0_29, %c0_30] : memref<16x32xf32, #tpu.memory_space<vmem>>, vector<2x32xf32>
    tpu.vector_store %arg13[%c0_29, %c0_30], %124 {strides = array<i32>} : memref<16x32xf32, #tpu.memory_space<vmem>>, vector<2x32xf32>,
    %126 = arith.truncf %123 : vector<6x32xf32> to vector<6x32xbf16>
    %127 = vector.extract_strided_slice %126 {offsets = [0, 0], sizes = [4, 32], strides = [1, 1]} : vector<6x32xbf16> to vector<4x32xbf16>
    %128 = tpu.concatenate %30, %127 in 0 : vector<2x32xbf16>, vector<4x32xbf16> -> vector<6x32xbf16>
    %cst_31 = arith.constant dense<0.000000e+00> : vector<6x384xf32>
    %129 = tpu.matmul %128, %18, %cst_31 {dimension_numbers = #tpu.dot_dimension_numbers<[1], [0], [0], [1], [0, 0, 1, 1], [], []>} : vector<6x32xbf16>, vector<32x384xbf16>, vector<6x384xf32> -> vector<6x384xf32>
    %cst_32 = arith.constant dense<0.000000e+00> : vector<6x384xf32>
    %130 = tpu.matmul %126, %19, %cst_32 {dimension_numbers = #tpu.dot_dimension_numbers<[1], [0], [0], [1], [0, 0, 1, 1], [], []>} : vector<6x32xbf16>, vector<32x384xbf16>, vector<6x384xf32> -> vector<6x384xf32>
    %131 = arith.addf %129, %130 : vector<6x384xf32>
    %132 = vector.extract_strided_slice %131 {offsets = [0, 0], sizes = [6, 128], strides = [1, 1]} : vector<6x384xf32> to vector<6x128xf32>
    %133 = vector.extract_strided_slice %131 {offsets = [0, 128], sizes = [6, 128], strides = [1, 1]} : vector<6x384xf32> to vector<6x128xf32>
    %134 = vector.extract_strided_slice %131 {offsets = [0, 256], sizes = [6, 128], strides = [1, 1]} : vector<6x384xf32> to vector<6x128xf32>
    %135 = arith.select %24, %133, %134 : vector<6x128xi1>, vector<6x128xf32>
    %136 = arith.select %22, %132, %135 : vector<6x128xi1>, vector<6x128xf32>
    %137 = vector.extract_strided_slice %17 {offsets = [3, 0, 0], sizes = [1, 6, 128], strides = [1, 1, 1]} : vector<8x6x128xf32> to vector<1x6x128xf32>
    %138 = vector.shape_cast %137 : vector<1x6x128xf32> to vector<6x128xf32>
    %139 = arith.addf %136, %138 : vector<6x128xf32>
    %140 = math.tanh %139 : vector<6x128xf32>
    %141 = vector.extract_strided_slice %140 {offsets = [0, 0], sizes = [6, 96], strides = [1, 1]} : vector<6x128xf32> to vector<6x96xf32>
    %cst_33 = arith.constant 5.000000e-01 : f32
    %142 = vector.broadcast %cst_33 : f32 to vector<6x96xf32>
    %143 = arith.mulf %142, %141 : vector<6x96xf32>
    %cst_34 = arith.constant 5.000000e-01 : f32
    %144 = vector.broadcast %cst_34 : f32 to vector<6x96xf32>
    %145 = arith.addf %143, %144 : vector<6x96xf32>
    %146 = vector.extract_strided_slice %145 {offsets = [0, 0], sizes = [6, 32], strides = [1, 1]} : vector<6x96xf32> to vector<6x32xf32>
    %147 = vector.extract_strided_slice %145 {offsets = [0, 32], sizes = [6, 32], strides = [1, 1]} : vector<6x96xf32> to vector<6x32xf32>
    %148 = vector.extract_strided_slice %145 {offsets = [0, 64], sizes = [6, 32], strides = [1, 1]} : vector<6x96xf32> to vector<6x32xf32>
    %149 = vector.extract_strided_slice %140 {offsets = [0, 96], sizes = [6, 32], strides = [1, 1]} : vector<6x128xf32> to vector<6x32xf32>
    %150 = arith.mulf %147, %121 : vector<6x32xf32>
    %151 = arith.mulf %146, %149 : vector<6x32xf32>
    %152 = arith.addf %150, %151 : vector<6x32xf32>
    %153 = math.tanh %152 : vector<6x32xf32>
    %154 = arith.mulf %148, %153 : vector<6x32xf32>
    %155 = vector.extract_strided_slice %154 {offsets = [4, 0], sizes = [2, 32], strides = [1, 1]} : vector<6x32xf32> to vector<2x32xf32>
    %c2 = arith.constant 2 : index
    %c0_35 = arith.constant 0 : index
    %156 = vector.load %arg13[%c2, %c0_35] : memref<16x32xf32, #tpu.memory_space<vmem>>, vector<2x32xf32>
    tpu.vector_store %arg13[%c2, %c0_35], %155 {strides = array<i32>} : memref<16x32xf32, #tpu.memory_space<vmem>>, vector<2x32xf32>,
    %157 = arith.truncf %154 : vector<6x32xf32> to vector<6x32xbf16>
    %158 = vector.extract_strided_slice %157 {offsets = [0, 0], sizes = [4, 32], strides = [1, 1]} : vector<6x32xbf16> to vector<4x32xbf16>
    %159 = tpu.concatenate %30, %158 in 0 : vector<2x32xbf16>, vector<4x32xbf16> -> vector<6x32xbf16>
    %cst_36 = arith.constant dense<0.000000e+00> : vector<6x384xf32>
    %160 = tpu.matmul %159, %18, %cst_36 {dimension_numbers = #tpu.dot_dimension_numbers<[1], [0], [0], [1], [0, 0, 1, 1], [], []>} : vector<6x32xbf16>, vector<32x384xbf16>, vector<6x384xf32> -> vector<6x384xf32>
    %cst_37 = arith.constant dense<0.000000e+00> : vector<6x384xf32>
    %161 = tpu.matmul %157, %19, %cst_37 {dimension_numbers = #tpu.dot_dimension_numbers<[1], [0], [0], [1], [0, 0, 1, 1], [], []>} : vector<6x32xbf16>, vector<32x384xbf16>, vector<6x384xf32> -> vector<6x384xf32>
    %162 = arith.addf %160, %161 : vector<6x384xf32>
    %163 = vector.extract_strided_slice %162 {offsets = [0, 0], sizes = [6, 128], strides = [1, 1]} : vector<6x384xf32> to vector<6x128xf32>
    %164 = vector.extract_strided_slice %162 {offsets = [0, 128], sizes = [6, 128], strides = [1, 1]} : vector<6x384xf32> to vector<6x128xf32>
    %165 = vector.extract_strided_slice %162 {offsets = [0, 256], sizes = [6, 128], strides = [1, 1]} : vector<6x384xf32> to vector<6x128xf32>
    %166 = arith.select %24, %164, %165 : vector<6x128xi1>, vector<6x128xf32>
    %167 = arith.select %22, %163, %166 : vector<6x128xi1>, vector<6x128xf32>
    %168 = vector.extract_strided_slice %17 {offsets = [4, 0, 0], sizes = [1, 6, 128], strides = [1, 1, 1]} : vector<8x6x128xf32> to vector<1x6x128xf32>
    %169 = vector.shape_cast %168 : vector<1x6x128xf32> to vector<6x128xf32>
    %170 = arith.addf %167, %169 : vector<6x128xf32>
    %171 = math.tanh %170 : vector<6x128xf32>
    %172 = vector.extract_strided_slice %171 {offsets = [0, 0], sizes = [6, 96], strides = [1, 1]} : vector<6x128xf32> to vector<6x96xf32>
    %cst_38 = arith.constant 5.000000e-01 : f32
    %173 = vector.broadcast %cst_38 : f32 to vector<6x96xf32>
    %174 = arith.mulf %173, %172 : vector<6x96xf32>
    %cst_39 = arith.constant 5.000000e-01 : f32
    %175 = vector.broadcast %cst_39 : f32 to vector<6x96xf32>
    %176 = arith.addf %174, %175 : vector<6x96xf32>
    %177 = vector.extract_strided_slice %176 {offsets = [0, 0], sizes = [6, 32], strides = [1, 1]} : vector<6x96xf32> to vector<6x32xf32>
    %178 = vector.extract_strided_slice %176 {offsets = [0, 32], sizes = [6, 32], strides = [1, 1]} : vector<6x96xf32> to vector<6x32xf32>
    %179 = vector.extract_strided_slice %176 {offsets = [0, 64], sizes = [6, 32], strides = [1, 1]} : vector<6x96xf32> to vector<6x32xf32>
    %180 = vector.extract_strided_slice %171 {offsets = [0, 96], sizes = [6, 32], strides = [1, 1]} : vector<6x128xf32> to vector<6x32xf32>
    %181 = arith.mulf %178, %152 : vector<6x32xf32>
    %182 = arith.mulf %177, %180 : vector<6x32xf32>
    %183 = arith.addf %181, %182 : vector<6x32xf32>
    %184 = math.tanh %183 : vector<6x32xf32>
    %185 = arith.mulf %179, %184 : vector<6x32xf32>
    %186 = vector.extract_strided_slice %185 {offsets = [4, 0], sizes = [2, 32], strides = [1, 1]} : vector<6x32xf32> to vector<2x32xf32>
    %c4 = arith.constant 4 : index
    %c0_40 = arith.constant 0 : index
    %187 = vector.load %arg13[%c4, %c0_40] : memref<16x32xf32, #tpu.memory_space<vmem>>, vector<2x32xf32>
    tpu.vector_store %arg13[%c4, %c0_40], %186 {strides = array<i32>} : memref<16x32xf32, #tpu.memory_space<vmem>>, vector<2x32xf32>,
    %188 = arith.truncf %185 : vector<6x32xf32> to vector<6x32xbf16>
    %189 = vector.extract_strided_slice %188 {offsets = [0, 0], sizes = [4, 32], strides = [1, 1]} : vector<6x32xbf16> to vector<4x32xbf16>
    %190 = tpu.concatenate %30, %189 in 0 : vector<2x32xbf16>, vector<4x32xbf16> -> vector<6x32xbf16>
    %cst_41 = arith.constant dense<0.000000e+00> : vector<6x384xf32>
    %191 = tpu.matmul %190, %18, %cst_41 {dimension_numbers = #tpu.dot_dimension_numbers<[1], [0], [0], [1], [0, 0, 1, 1], [], []>} : vector<6x32xbf16>, vector<32x384xbf16>, vector<6x384xf32> -> vector<6x384xf32>
    %cst_42 = arith.constant dense<0.000000e+00> : vector<6x384xf32>
    %192 = tpu.matmul %188, %19, %cst_42 {dimension_numbers = #tpu.dot_dimension_numbers<[1], [0], [0], [1], [0, 0, 1, 1], [], []>} : vector<6x32xbf16>, vector<32x384xbf16>, vector<6x384xf32> -> vector<6x384xf32>
    %193 = arith.addf %191, %192 : vector<6x384xf32>
    %194 = vector.extract_strided_slice %193 {offsets = [0, 0], sizes = [6, 128], strides = [1, 1]} : vector<6x384xf32> to vector<6x128xf32>
    %195 = vector.extract_strided_slice %193 {offsets = [0, 128], sizes = [6, 128], strides = [1, 1]} : vector<6x384xf32> to vector<6x128xf32>
    %196 = vector.extract_strided_slice %193 {offsets = [0, 256], sizes = [6, 128], strides = [1, 1]} : vector<6x384xf32> to vector<6x128xf32>
    %197 = arith.select %24, %195, %196 : vector<6x128xi1>, vector<6x128xf32>
    %198 = arith.select %22, %194, %197 : vector<6x128xi1>, vector<6x128xf32>
    %199 = vector.extract_strided_slice %17 {offsets = [5, 0, 0], sizes = [1, 6, 128], strides = [1, 1, 1]} : vector<8x6x128xf32> to vector<1x6x128xf32>
    %200 = vector.shape_cast %199 : vector<1x6x128xf32> to vector<6x128xf32>
    %201 = arith.addf %198, %200 : vector<6x128xf32>
    %202 = math.tanh %201 : vector<6x128xf32>
    %203 = vector.extract_strided_slice %202 {offsets = [0, 0], sizes = [6, 96], strides = [1, 1]} : vector<6x128xf32> to vector<6x96xf32>
    %cst_43 = arith.constant 5.000000e-01 : f32
    %204 = vector.broadcast %cst_43 : f32 to vector<6x96xf32>
    %205 = arith.mulf %204, %203 : vector<6x96xf32>
    %cst_44 = arith.constant 5.000000e-01 : f32
    %206 = vector.broadcast %cst_44 : f32 to vector<6x96xf32>
    %207 = arith.addf %205, %206 : vector<6x96xf32>
    %208 = vector.extract_strided_slice %207 {offsets = [0, 0], sizes = [6, 32], strides = [1, 1]} : vector<6x96xf32> to vector<6x32xf32>
    %209 = vector.extract_strided_slice %207 {offsets = [0, 32], sizes = [6, 32], strides = [1, 1]} : vector<6x96xf32> to vector<6x32xf32>
    %210 = vector.extract_strided_slice %207 {offsets = [0, 64], sizes = [6, 32], strides = [1, 1]} : vector<6x96xf32> to vector<6x32xf32>
    %211 = vector.extract_strided_slice %202 {offsets = [0, 96], sizes = [6, 32], strides = [1, 1]} : vector<6x128xf32> to vector<6x32xf32>
    %212 = arith.mulf %209, %183 : vector<6x32xf32>
    %213 = arith.mulf %208, %211 : vector<6x32xf32>
    %214 = arith.addf %212, %213 : vector<6x32xf32>
    %215 = math.tanh %214 : vector<6x32xf32>
    %216 = arith.mulf %210, %215 : vector<6x32xf32>
    %217 = vector.extract_strided_slice %216 {offsets = [4, 0], sizes = [2, 32], strides = [1, 1]} : vector<6x32xf32> to vector<2x32xf32>
    %c6 = arith.constant 6 : index
    %c0_45 = arith.constant 0 : index
    %218 = vector.load %arg13[%c6, %c0_45] : memref<16x32xf32, #tpu.memory_space<vmem>>, vector<2x32xf32>
    tpu.vector_store %arg13[%c6, %c0_45], %217 {strides = array<i32>} : memref<16x32xf32, #tpu.memory_space<vmem>>, vector<2x32xf32>,
    %219 = arith.truncf %216 : vector<6x32xf32> to vector<6x32xbf16>
    %220 = vector.extract_strided_slice %219 {offsets = [0, 0], sizes = [4, 32], strides = [1, 1]} : vector<6x32xbf16> to vector<4x32xbf16>
    %221 = tpu.concatenate %30, %220 in 0 : vector<2x32xbf16>, vector<4x32xbf16> -> vector<6x32xbf16>
    %cst_46 = arith.constant dense<0.000000e+00> : vector<6x384xf32>
    %222 = tpu.matmul %221, %18, %cst_46 {dimension_numbers = #tpu.dot_dimension_numbers<[1], [0], [0], [1], [0, 0, 1, 1], [], []>} : vector<6x32xbf16>, vector<32x384xbf16>, vector<6x384xf32> -> vector<6x384xf32>
    %cst_47 = arith.constant dense<0.000000e+00> : vector<6x384xf32>
    %223 = tpu.matmul %219, %19, %cst_47 {dimension_numbers = #tpu.dot_dimension_numbers<[1], [0], [0], [1], [0, 0, 1, 1], [], []>} : vector<6x32xbf16>, vector<32x384xbf16>, vector<6x384xf32> -> vector<6x384xf32>
    %224 = arith.addf %222, %223 : vector<6x384xf32>
    %225 = vector.extract_strided_slice %224 {offsets = [0, 0], sizes = [6, 128], strides = [1, 1]} : vector<6x384xf32> to vector<6x128xf32>
    %226 = vector.extract_strided_slice %224 {offsets = [0, 128], sizes = [6, 128], strides = [1, 1]} : vector<6x384xf32> to vector<6x128xf32>
    %227 = vector.extract_strided_slice %224 {offsets = [0, 256], sizes = [6, 128], strides = [1, 1]} : vector<6x384xf32> to vector<6x128xf32>
    %228 = arith.select %24, %226, %227 : vector<6x128xi1>, vector<6x128xf32>
    %229 = arith.select %22, %225, %228 : vector<6x128xi1>, vector<6x128xf32>
    %230 = vector.extract_strided_slice %17 {offsets = [6, 0, 0], sizes = [1, 6, 128], strides = [1, 1, 1]} : vector<8x6x128xf32> to vector<1x6x128xf32>
    %231 = vector.shape_cast %230 : vector<1x6x128xf32> to vector<6x128xf32>
    %232 = arith.addf %229, %231 : vector<6x128xf32>
    %233 = math.tanh %232 : vector<6x128xf32>
    %234 = vector.extract_strided_slice %233 {offsets = [0, 0], sizes = [6, 96], strides = [1, 1]} : vector<6x128xf32> to vector<6x96xf32>
    %cst_48 = arith.constant 5.000000e-01 : f32
    %235 = vector.broadcast %cst_48 : f32 to vector<6x96xf32>
    %236 = arith.mulf %235, %234 : vector<6x96xf32>
    %cst_49 = arith.constant 5.000000e-01 : f32
    %237 = vector.broadcast %cst_49 : f32 to vector<6x96xf32>
    %238 = arith.addf %236, %237 : vector<6x96xf32>
    %239 = vector.extract_strided_slice %238 {offsets = [0, 0], sizes = [6, 32], strides = [1, 1]} : vector<6x96xf32> to vector<6x32xf32>
    %240 = vector.extract_strided_slice %238 {offsets = [0, 32], sizes = [6, 32], strides = [1, 1]} : vector<6x96xf32> to vector<6x32xf32>
    %241 = vector.extract_strided_slice %238 {offsets = [0, 64], sizes = [6, 32], strides = [1, 1]} : vector<6x96xf32> to vector<6x32xf32>
    %242 = vector.extract_strided_slice %233 {offsets = [0, 96], sizes = [6, 32], strides = [1, 1]} : vector<6x128xf32> to vector<6x32xf32>
    %243 = arith.mulf %240, %214 : vector<6x32xf32>
    %244 = arith.mulf %239, %242 : vector<6x32xf32>
    %245 = arith.addf %243, %244 : vector<6x32xf32>
    %246 = math.tanh %245 : vector<6x32xf32>
    %247 = arith.mulf %241, %246 : vector<6x32xf32>
    %248 = vector.extract_strided_slice %247 {offsets = [4, 0], sizes = [2, 32], strides = [1, 1]} : vector<6x32xf32> to vector<2x32xf32>
    %c8 = arith.constant 8 : index
    %c0_50 = arith.constant 0 : index
    %249 = vector.load %arg13[%c8, %c0_50] : memref<16x32xf32, #tpu.memory_space<vmem>>, vector<2x32xf32>
    tpu.vector_store %arg13[%c8, %c0_50], %248 {strides = array<i32>} : memref<16x32xf32, #tpu.memory_space<vmem>>, vector<2x32xf32>,
    %250 = arith.truncf %247 : vector<6x32xf32> to vector<6x32xbf16>
    %251 = vector.extract_strided_slice %250 {offsets = [0, 0], sizes = [4, 32], strides = [1, 1]} : vector<6x32xbf16> to vector<4x32xbf16>
    %252 = tpu.concatenate %30, %251 in 0 : vector<2x32xbf16>, vector<4x32xbf16> -> vector<6x32xbf16>
    %cst_51 = arith.constant dense<0.000000e+00> : vector<6x384xf32>
    %253 = tpu.matmul %252, %18, %cst_51 {dimension_numbers = #tpu.dot_dimension_numbers<[1], [0], [0], [1], [0, 0, 1, 1], [], []>} : vector<6x32xbf16>, vector<32x384xbf16>, vector<6x384xf32> -> vector<6x384xf32>
    %cst_52 = arith.constant dense<0.000000e+00> : vector<6x384xf32>
    %254 = tpu.matmul %250, %19, %cst_52 {dimension_numbers = #tpu.dot_dimension_numbers<[1], [0], [0], [1], [0, 0, 1, 1], [], []>} : vector<6x32xbf16>, vector<32x384xbf16>, vector<6x384xf32> -> vector<6x384xf32>
    %255 = arith.addf %253, %254 : vector<6x384xf32>
    %256 = vector.extract_strided_slice %255 {offsets = [0, 0], sizes = [6, 128], strides = [1, 1]} : vector<6x384xf32> to vector<6x128xf32>
    %257 = vector.extract_strided_slice %255 {offsets = [0, 128], sizes = [6, 128], strides = [1, 1]} : vector<6x384xf32> to vector<6x128xf32>
    %258 = vector.extract_strided_slice %255 {offsets = [0, 256], sizes = [6, 128], strides = [1, 1]} : vector<6x384xf32> to vector<6x128xf32>
    %259 = arith.select %24, %257, %258 : vector<6x128xi1>, vector<6x128xf32>
    %260 = arith.select %22, %256, %259 : vector<6x128xi1>, vector<6x128xf32>
    %261 = vector.extract_strided_slice %17 {offsets = [7, 0, 0], sizes = [1, 6, 128], strides = [1, 1, 1]} : vector<8x6x128xf32> to vector<1x6x128xf32>
    %262 = vector.shape_cast %261 : vector<1x6x128xf32> to vector<6x128xf32>
    %263 = arith.addf %260, %262 : vector<6x128xf32>
    %264 = math.tanh %263 : vector<6x128xf32>
    %265 = vector.extract_strided_slice %264 {offsets = [0, 0], sizes = [6, 96], strides = [1, 1]} : vector<6x128xf32> to vector<6x96xf32>
    %cst_53 = arith.constant 5.000000e-01 : f32
    %266 = vector.broadcast %cst_53 : f32 to vector<6x96xf32>
    %267 = arith.mulf %266, %265 : vector<6x96xf32>
    %cst_54 = arith.constant 5.000000e-01 : f32
    %268 = vector.broadcast %cst_54 : f32 to vector<6x96xf32>
    %269 = arith.addf %267, %268 : vector<6x96xf32>
    %270 = vector.extract_strided_slice %269 {offsets = [0, 0], sizes = [6, 32], strides = [1, 1]} : vector<6x96xf32> to vector<6x32xf32>
    %271 = vector.extract_strided_slice %269 {offsets = [0, 32], sizes = [6, 32], strides = [1, 1]} : vector<6x96xf32> to vector<6x32xf32>
    %272 = vector.extract_strided_slice %269 {offsets = [0, 64], sizes = [6, 32], strides = [1, 1]} : vector<6x96xf32> to vector<6x32xf32>
    %273 = vector.extract_strided_slice %264 {offsets = [0, 96], sizes = [6, 32], strides = [1, 1]} : vector<6x128xf32> to vector<6x32xf32>
    %274 = arith.mulf %271, %245 : vector<6x32xf32>
    %275 = arith.mulf %270, %273 : vector<6x32xf32>
    %276 = arith.addf %274, %275 : vector<6x32xf32>
    %277 = math.tanh %276 : vector<6x32xf32>
    %278 = arith.mulf %272, %277 : vector<6x32xf32>
    %279 = vector.extract_strided_slice %278 {offsets = [4, 0], sizes = [2, 32], strides = [1, 1]} : vector<6x32xf32> to vector<2x32xf32>
    %c10 = arith.constant 10 : index
    %c0_55 = arith.constant 0 : index
    %280 = vector.load %arg13[%c10, %c0_55] : memref<16x32xf32, #tpu.memory_space<vmem>>, vector<2x32xf32>
    tpu.vector_store %arg13[%c10, %c0_55], %279 {strides = array<i32>} : memref<16x32xf32, #tpu.memory_space<vmem>>, vector<2x32xf32>,
    %281 = arith.truncf %278 : vector<6x32xf32> to vector<6x32xbf16>
    %282 = vector.extract_strided_slice %281 {offsets = [0, 0], sizes = [4, 32], strides = [1, 1]} : vector<6x32xbf16> to vector<4x32xbf16>
    %283 = tpu.concatenate %30, %282 in 0 : vector<2x32xbf16>, vector<4x32xbf16> -> vector<6x32xbf16>
    %cst_56 = arith.constant dense<0.000000e+00> : vector<6x384xf32>
    %284 = tpu.matmul %283, %18, %cst_56 {dimension_numbers = #tpu.dot_dimension_numbers<[1], [0], [0], [1], [0, 0, 1, 1], [], []>} : vector<6x32xbf16>, vector<32x384xbf16>, vector<6x384xf32> -> vector<6x384xf32>
    %cst_57 = arith.constant dense<0.000000e+00> : vector<6x384xf32>
    %285 = tpu.matmul %281, %19, %cst_57 {dimension_numbers = #tpu.dot_dimension_numbers<[1], [0], [0], [1], [0, 0, 1, 1], [], []>} : vector<6x32xbf16>, vector<32x384xbf16>, vector<6x384xf32> -> vector<6x384xf32>
    %286 = arith.addf %284, %285 : vector<6x384xf32>
    %287 = vector.extract_strided_slice %286 {offsets = [0, 0], sizes = [6, 128], strides = [1, 1]} : vector<6x384xf32> to vector<6x128xf32>
    %288 = vector.extract_strided_slice %286 {offsets = [0, 128], sizes = [6, 128], strides = [1, 1]} : vector<6x384xf32> to vector<6x128xf32>
    %289 = vector.extract_strided_slice %286 {offsets = [0, 256], sizes = [6, 128], strides = [1, 1]} : vector<6x384xf32> to vector<6x128xf32>
    %290 = arith.select %24, %288, %289 : vector<6x128xi1>, vector<6x128xf32>
    %291 = arith.select %22, %287, %290 : vector<6x128xi1>, vector<6x128xf32>
    %292 = vector.extract_strided_slice %17 {offsets = [7, 0, 0], sizes = [1, 6, 128], strides = [1, 1, 1]} : vector<8x6x128xf32> to vector<1x6x128xf32>
    %293 = vector.shape_cast %292 : vector<1x6x128xf32> to vector<6x128xf32>
    %294 = arith.addf %291, %293 : vector<6x128xf32>
    %295 = math.tanh %294 : vector<6x128xf32>
    %296 = vector.extract_strided_slice %295 {offsets = [0, 0], sizes = [6, 96], strides = [1, 1]} : vector<6x128xf32> to vector<6x96xf32>
    %cst_58 = arith.constant 5.000000e-01 : f32
    %297 = vector.broadcast %cst_58 : f32 to vector<6x96xf32>
    %298 = arith.mulf %297, %296 : vector<6x96xf32>
    %cst_59 = arith.constant 5.000000e-01 : f32
    %299 = vector.broadcast %cst_59 : f32 to vector<6x96xf32>
    %300 = arith.addf %298, %299 : vector<6x96xf32>
    %301 = vector.extract_strided_slice %300 {offsets = [0, 0], sizes = [6, 32], strides = [1, 1]} : vector<6x96xf32> to vector<6x32xf32>
    %302 = vector.extract_strided_slice %300 {offsets = [0, 32], sizes = [6, 32], strides = [1, 1]} : vector<6x96xf32> to vector<6x32xf32>
    %303 = vector.extract_strided_slice %300 {offsets = [0, 64], sizes = [6, 32], strides = [1, 1]} : vector<6x96xf32> to vector<6x32xf32>
    %304 = vector.extract_strided_slice %295 {offsets = [0, 96], sizes = [6, 32], strides = [1, 1]} : vector<6x128xf32> to vector<6x32xf32>
    %305 = arith.mulf %302, %276 : vector<6x32xf32>
    %306 = arith.mulf %301, %304 : vector<6x32xf32>
    %307 = arith.addf %305, %306 : vector<6x32xf32>
    %308 = math.tanh %307 : vector<6x32xf32>
    %309 = arith.mulf %303, %308 : vector<6x32xf32>
    %310 = vector.extract_strided_slice %309 {offsets = [4, 0], sizes = [2, 32], strides = [1, 1]} : vector<6x32xf32> to vector<2x32xf32>
    %c12 = arith.constant 12 : index
    %c0_60 = arith.constant 0 : index
    %311 = vector.load %arg13[%c12, %c0_60] : memref<16x32xf32, #tpu.memory_space<vmem>>, vector<2x32xf32>
    tpu.vector_store %arg13[%c12, %c0_60], %310 {strides = array<i32>} : memref<16x32xf32, #tpu.memory_space<vmem>>, vector<2x32xf32>,
    %312 = arith.truncf %309 : vector<6x32xf32> to vector<6x32xbf16>
    %313 = vector.extract_strided_slice %312 {offsets = [0, 0], sizes = [4, 32], strides = [1, 1]} : vector<6x32xbf16> to vector<4x32xbf16>
    %314 = tpu.concatenate %30, %313 in 0 : vector<2x32xbf16>, vector<4x32xbf16> -> vector<6x32xbf16>
    %cst_61 = arith.constant dense<0.000000e+00> : vector<6x384xf32>
    %315 = tpu.matmul %314, %18, %cst_61 {dimension_numbers = #tpu.dot_dimension_numbers<[1], [0], [0], [1], [0, 0, 1, 1], [], []>} : vector<6x32xbf16>, vector<32x384xbf16>, vector<6x384xf32> -> vector<6x384xf32>
    %cst_62 = arith.constant dense<0.000000e+00> : vector<6x384xf32>
    %316 = tpu.matmul %312, %19, %cst_62 {dimension_numbers = #tpu.dot_dimension_numbers<[1], [0], [0], [1], [0, 0, 1, 1], [], []>} : vector<6x32xbf16>, vector<32x384xbf16>, vector<6x384xf32> -> vector<6x384xf32>
    %317 = arith.addf %315, %316 : vector<6x384xf32>
    %318 = vector.extract_strided_slice %317 {offsets = [0, 0], sizes = [6, 128], strides = [1, 1]} : vector<6x384xf32> to vector<6x128xf32>
    %319 = vector.extract_strided_slice %317 {offsets = [0, 128], sizes = [6, 128], strides = [1, 1]} : vector<6x384xf32> to vector<6x128xf32>
    %320 = vector.extract_strided_slice %317 {offsets = [0, 256], sizes = [6, 128], strides = [1, 1]} : vector<6x384xf32> to vector<6x128xf32>
    %321 = arith.select %24, %319, %320 : vector<6x128xi1>, vector<6x128xf32>
    %322 = arith.select %22, %318, %321 : vector<6x128xi1>, vector<6x128xf32>
    %323 = vector.extract_strided_slice %17 {offsets = [7, 0, 0], sizes = [1, 6, 128], strides = [1, 1, 1]} : vector<8x6x128xf32> to vector<1x6x128xf32>
    %324 = vector.shape_cast %323 : vector<1x6x128xf32> to vector<6x128xf32>
    %325 = arith.addf %322, %324 : vector<6x128xf32>
    %326 = math.tanh %325 : vector<6x128xf32>
    %327 = vector.extract_strided_slice %326 {offsets = [0, 0], sizes = [6, 96], strides = [1, 1]} : vector<6x128xf32> to vector<6x96xf32>
    %cst_63 = arith.constant 5.000000e-01 : f32
    %328 = vector.broadcast %cst_63 : f32 to vector<6x96xf32>
    %329 = arith.mulf %328, %327 : vector<6x96xf32>
    %cst_64 = arith.constant 5.000000e-01 : f32
    %330 = vector.broadcast %cst_64 : f32 to vector<6x96xf32>
    %331 = arith.addf %329, %330 : vector<6x96xf32>
    %332 = vector.extract_strided_slice %331 {offsets = [0, 0], sizes = [6, 32], strides = [1, 1]} : vector<6x96xf32> to vector<6x32xf32>
    %333 = vector.extract_strided_slice %331 {offsets = [0, 32], sizes = [6, 32], strides = [1, 1]} : vector<6x96xf32> to vector<6x32xf32>
    %334 = vector.extract_strided_slice %331 {offsets = [0, 64], sizes = [6, 32], strides = [1, 1]} : vector<6x96xf32> to vector<6x32xf32>
    %335 = vector.extract_strided_slice %326 {offsets = [0, 96], sizes = [6, 32], strides = [1, 1]} : vector<6x128xf32> to vector<6x32xf32>
    %336 = arith.mulf %333, %307 : vector<6x32xf32>
    %337 = arith.mulf %332, %335 : vector<6x32xf32>
    %338 = arith.addf %336, %337 : vector<6x32xf32>
    %339 = math.tanh %338 : vector<6x32xf32>
    %340 = arith.mulf %334, %339 : vector<6x32xf32>
    %341 = vector.extract_strided_slice %340 {offsets = [4, 0], sizes = [2, 32], strides = [1, 1]} : vector<6x32xf32> to vector<2x32xf32>
    %c14 = arith.constant 14 : index
    %c0_65 = arith.constant 0 : index
    %342 = vector.load %arg13[%c14, %c0_65] : memref<16x32xf32, #tpu.memory_space<vmem>>, vector<2x32xf32>
    tpu.vector_store %arg13[%c14, %c0_65], %341 {strides = array<i32>} : memref<16x32xf32, #tpu.memory_space<vmem>>, vector<2x32xf32>,
    %c0_66 = arith.constant 0 : index
    %c0_67 = arith.constant 0 : index
    %343 = vector.load %arg13[%c0_66, %c0_67] : memref<16x32xf32, #tpu.memory_space<vmem>>, vector<16x32xf32>
    %344 = arith.truncf %343 : vector<16x32xf32> to vector<16x32xbf16>
    %c0_68 = arith.constant 0 : index
    %c0_69 = arith.constant 0 : index
    %345 = vector.load %arg8[%c0_68, %c0_69] : memref<32x32xbf16, #tpu.memory_space<vmem>>, vector<32x32xbf16>
    %cst_70 = arith.constant dense<0.000000e+00> : vector<16x32xf32>
    %346 = tpu.matmul %344, %345, %cst_70 {dimension_numbers = #tpu.dot_dimension_numbers<[1], [0], [0], [1], [0, 0, 1, 1], [], []>} : vector<16x32xbf16>, vector<32x32xbf16>, vector<16x32xf32> -> vector<16x32xf32>
    %c0_71 = arith.constant 0 : index
    %c0_72 = arith.constant 0 : index
    %347 = vector.load %arg9[%c0_71, %c0_72] : memref<1x32xf32, #tpu.memory_space<vmem>>, vector<1x32xf32>
    %348 = vector.broadcast %347 : vector<1x32xf32> to vector<16x32xf32>
    %349 = arith.addf %346, %348 : vector<16x32xf32>
    %cst_73 = arith.constant 0.000000e+00 : f32
    %350 = vector.broadcast %cst_73 : f32 to vector<16x32xf32>
    %351 = arith.cmpf oge, %349, %350 : vector<16x32xf32>
    %cst_74 = arith.constant 0.00999999977 : f32
    %352 = vector.broadcast %cst_74 : f32 to vector<16x32xf32>
    %353 = arith.mulf %352, %349 : vector<16x32xf32>
    %354 = arith.select %351, %349, %353 : vector<16x32xi1>, vector<16x32xf32>
    %c0_75 = arith.constant 0 : index
    %c0_76 = arith.constant 0 : index
    %355 = vector.load %arg10[%c0_75, %c0_76] : memref<1x32xf32, #tpu.memory_space<vmem>>, vector<1x32xf32>
    %356 = vector.broadcast %355 : vector<1x32xf32> to vector<16x32xf32>
    %357 = arith.mulf %354, %356 : vector<16x32xf32>
    %cst_77 = arith.constant dense<0.000000e+00> : vector<16xf32>
    %358 = vector.multi_reduction <add>, %357, %cst_77 [1] : vector<16x32xf32> to vector<16xf32>
    %359 = vector.shape_cast %358 : vector<16xf32> to vector<16x1xf32>
    %c0_78 = arith.constant 0 : index
    %c0_79 = arith.constant 0 : index
    %360 = vector.load %arg11[%c0_78, %c0_79] : memref<1x1xf32, #tpu.memory_space<vmem>>, vector<1x1xf32>
    %361 = vector.broadcast %360 : vector<1x1xf32> to vector<16x1xf32>
    %362 = arith.addf %359, %361 : vector<16x1xf32>
    %c0_80 = arith.constant 0 : index
    %c0_81 = arith.constant 0 : index
    %363 = vector.load %arg12[%c0_80, %c0_81] : memref<16x1xf32, #tpu.memory_space<vmem>>, vector<16x1xf32>
    tpu.vector_store %arg12[%c0_80, %c0_81], %362 {strides = array<i32>} : memref<16x1xf32, #tpu.memory_space<vmem>>, vector<16x1xf32>,
    return
  }
  func.func @transform_0(%arg0: i32) -> (i32, i32) {
    %c0_i32 = arith.constant 0 : i32
    %c0_i32_0 = arith.constant 0 : i32
    %c0_i32_1 = arith.constant 0 : i32
    return %c0_i32, %c0_i32_0 : i32, i32
  }
  func.func @transform_1(%arg0: i32) -> (i32, i32) {
    %c0_i32 = arith.constant 0 : i32
    %c0_i32_0 = arith.constant 0 : i32
    %c0_i32_1 = arith.constant 0 : i32
    return %c0_i32, %c0_i32_0 : i32, i32
  }
  func.func @transform_2(%arg0: i32) -> (i32, i32) {
    %c0_i32 = arith.constant 0 : i32
    %c0_i32_0 = arith.constant 0 : i32
    %c0_i32_1 = arith.constant 0 : i32
    return %c0_i32, %c0_i32_0 : i32, i32
  }
  func.func @transform_3(%arg0: i32) -> (i32, i32) {
    %c0_i32 = arith.constant 0 : i32
    %c0_i32_0 = arith.constant 0 : i32
    %c0_i32_1 = arith.constant 0 : i32
    return %c0_i32, %c0_i32_0 : i32, i32
  }
  func.func @transform_4(%arg0: i32) -> (i32, i32) {
    %c0_i32 = arith.constant 0 : i32
    %c0_i32_0 = arith.constant 0 : i32
    %c0_i32_1 = arith.constant 0 : i32
    return %c0_i32, %c0_i32_0 : i32, i32
  }
  func.func @transform_5(%arg0: i32) -> (i32, i32) {
    %c0_i32 = arith.constant 0 : i32
    %c0_i32_0 = arith.constant 0 : i32
    %c0_i32_1 = arith.constant 0 : i32
    return %c0_i32, %c0_i32_0 : i32, i32
  }
  func.func @transform_6(%arg0: i32) -> (i32, i32) {
    %c0_i32 = arith.constant 0 : i32
    %c0_i32_0 = arith.constant 0 : i32
    %c0_i32_1 = arith.constant 0 : i32
    return %c0_i32, %c0_i32_0 : i32, i32
  }
  func.func @transform_7(%arg0: i32) -> (i32, i32) {
    %c0_i32 = arith.constant 0 : i32
    %c0_i32_0 = arith.constant 0 : i32
    %c0_i32_1 = arith.constant 0 : i32
    return %c0_i32, %c0_i32_0 : i32, i32
  }
  func.func @transform_8(%arg0: i32) -> (i32, i32) {
    %c0_i32 = arith.constant 0 : i32
    %c0_i32_0 = arith.constant 0 : i32
    %c0_i32_1 = arith.constant 0 : i32
    return %c0_i32, %c0_i32_0 : i32, i32
  }
  func.func @transform_9(%arg0: i32) -> (i32, i32) {
    %c0_i32 = arith.constant 0 : i32
    %c0_i32_0 = arith.constant 0 : i32
    %c0_i32_1 = arith.constant 0 : i32
    return %c0_i32, %c0_i32_0 : i32, i32
  }
  func.func @transform_10(%arg0: i32) -> (i32, i32) {
    %c0_i32 = arith.constant 0 : i32
    %c0_i32_0 = arith.constant 0 : i32
    %c0_i32_1 = arith.constant 0 : i32
    return %c0_i32, %c0_i32_0 : i32, i32
  }
  func.func @transform_11(%arg0: i32) -> (i32, i32) {
    %c0_i32 = arith.constant 0 : i32
    %c0_i32_0 = arith.constant 0 : i32
    %c0_i32_1 = arith.constant 0 : i32
    return %c0_i32, %c0_i32_0 : i32, i32
  }
}

</mosaic_0001>

<bundles_post_ra>
// kernel: lstm_forward.1
= control target key start
LH: loop header
LB: loop body
LE: loop exit
PB: predicated region body
PF: predicated region fallthrough
CT: control target
= control target key end

     0   :  { %s3658_s0 = inlined_call_operand.vmem [shape: f32[16,1], index: 0, kind: input, shape index: {}]   ;;  %s3659_s1 = inlined_call_operand.vmem [shape: f32[1,128], index: 1, kind: input, shape index: {}]   ;;  %s3660_s2 = inlined_call_operand.vmem [shape: f32[1,128], index: 2, kind: input, shape index: {}]   ;;  %s3661_s3 = inlined_call_operand.vmem [shape: f32[1,128], index: 3, kind: input, shape index: {}]   ;;  %s3662_s4 = inlined_call_operand.vmem [shape: f32[1,128], index: 4, kind: input, shape index: {}]   ;;  %s3663_s5 = inlined_call_operand.vmem [shape: bf16[32,384], index: 5, kind: input, shape index: {}]   ;;  %s3664_s6 = inlined_call_operand.hbm [shape: bf16[32,384], index: 6, kind: input, shape index: {}]   ;;  %s3665_s7 = inlined_call_operand.hbm [shape: bf16[32,32], index: 7, kind: input, shape index: {}]   ;;  %s3666_s8 = inlined_call_operand.vmem [shape: f32[1,32], index: 8, kind: input, shape index: {}]   ;;  %s3667_s9 = inlined_call_operand.hbm [shape: f32[1,32], index: 9, kind: input, shape index: {}]   ;;  %s3668_s10 = inlined_call_operand.<no memory space> [shape: f32[1,1], index: 10, kind: input, shape index: {}]   ;;  %s3669_s11 = inlined_call_operand.vmem [shape: f32[16,1], index: 11, kind: output, shape index: {}]  }
   0x1   :  { %v16_v0 = vstv %s3668_s10 }
   0x2   :  { %17 = vst [vmem:[#allocation3] sm:$0x1] %v16_v0 }
   0x3   :  { %18 = vsyncpa [#allocation5], 0 }
   0x4   :  { %19 = vsyncpa [#allocation7], 0  ;;  %s2928_s19 = smov [#allocation6]   ;;  %s2858_s23 = scalar_lea.hbm %s3665_s7, 256 }
   0x5   :  { %s49_s20 = sshll.u32 %s2928_s19, 4  ;;  %p2859_p0 = scmp.ne.s32.totalorder %s3665_s7, %s2858_s23  ;;  %s50_s20 = int_to_ptr.vmem [resolvable:$true] %s49_s20 }
   0x6   :  { %p2862_p1 = scmp.lt.u32.totalorder %s2858_s23, %s3665_s7 }
   0x8   :  { %p2864_p2 = pnand %p2862_p1, %p2859_p0 }
   0xa   :  { %2867 = shalt.err (!%p2864_p2)
}
   0xb   :  { %s2868_s10 = scalar_lea.vmem %s50_s20, 256  ;;  %p2873_p4 = scmp.lt.s32.totalorder %s50_s20, %s50_s20 }
   0xc   :  { %p2869_p3 = scmp.ne.s32.totalorder %s50_s20, %s2868_s10  ;;  %p2874_p5 = scmp.lt.s32.totalorder %s2868_s10, %s2868_s10 }
   0xe   :  { %p2875_p6 = por %p2874_p5, %p2873_p4 }
  0x10   :  { %p2876_p7 = pnand %p2875_p6, %p2869_p3 }
  0x12   :  { %2879 = shalt.err (!%p2876_p7)
}
  0x13   :  { %s2929_s28 = smov 64   ;;  %s2930_s29 = smov 4  }
  0x14   :  { %55 = dma.hbm_to_vmem [thread:$0]  %s3665_s7, 256, %s50_s20, [#allocation7], %s2929_s28, %s2929_s28, %s2930_s29  }
  0x15   :  { %s2931_s13 = smov [#allocation4]   ;;  %s2880_s17 = scalar_lea.hbm %s3664_s6, 768 }
  0x16   :  { %s37_s14 = sshll.u32 %s2931_s13, 4  ;;  %p2881_p8 = scmp.ne.s32.totalorder %s3664_s6, %s2880_s17  ;;  %s38_s14 = int_to_ptr.vmem [resolvable:$true] %s37_s14 }
  0x17   :  { %p2884_p9 = scmp.lt.u32.totalorder %s2880_s17, %s3664_s6 }
  0x19   :  { %p2886_p10 = pnand %p2884_p9, %p2881_p8 }
  0x1b   :  { %2889 = shalt.err (!%p2886_p10)
}
  0x1c   :  { %s2890_s23 = scalar_lea.vmem %s38_s14, 768  ;;  %p2895_p12 = scmp.lt.s32.totalorder %s38_s14, %s38_s14 }
  0x1d   :  { %p2891_p11 = scmp.ne.s32.totalorder %s38_s14, %s2890_s23  ;;  %p2896_p13 = scmp.lt.s32.totalorder %s2890_s23, %s2890_s23 }
  0x1f   :  { %p2897_p0 = por %p2896_p13, %p2895_p12 }
  0x21   :  { %p2898_p1 = pnand %p2897_p0, %p2891_p11 }
  0x23   :  { %2901 = shalt.err (!%p2898_p1)
}
  0x24   :  { %s2932_s7 = smov 192   ;;  %s2933_s20 = smov 12  }
  0x25   :  { %43 = dma.hbm_to_vmem [thread:$0]  %s3664_s6, 768, %s38_s14, [#allocation5], %s2932_s7, %s2932_s7, %s2933_s20  }
  0x26   :  { %s2934_s26 = smov [#allocation8]   ;;  %s2902_s30 = scalar_lea.hbm %s3667_s9, 16 }
  0x27   :  { %s64_s27 = sshll.u32 %s2934_s26, 4  ;;  %p2903_p2 = scmp.ne.s32.totalorder %s3667_s9, %s2902_s30  ;;  %s65_s27 = int_to_ptr.vmem [resolvable:$true] %s64_s27 }
  0x28   :  { %p2906_p3 = scmp.lt.u32.totalorder %s2902_s30, %s3667_s9 }
  0x2a   :  { %p2908_p4 = pnand %p2906_p3, %p2903_p2 }
  0x2c   :  { %2911 = shalt.err (!%p2908_p4)
}
  0x2d   :  { %s2912_s17 = scalar_lea.vmem %s65_s27, 16  ;;  %s2916_s6 = scalar_lea.vmem %s65_s27, 32 }
  0x2e   :  { %p2913_p5 = scmp.ne.s32.totalorder %s65_s27, %s2912_s17  ;;  %p2917_p6 = scmp.lt.s32.totalorder %s65_s27, %s65_s27 }
  0x2f   :  { %p2918_p7 = scmp.lt.s32.totalorder %s2916_s6, %s2912_s17 }
  0x31   :  { %p2919_p8 = por %p2918_p7, %p2917_p6 }
  0x33   :  { %p2920_p9 = pnand %p2919_p8, %p2913_p5 }
  0x35   :  { %2923 = shalt.err (!%p2920_p9)
}
  0x36   :  { %67 = dma.hbm_to_vmem [thread:$0]  %s3667_s9, 16, %s65_s27, [#allocation7]  }
  0x37   :  { %2924 = dma.done.wait [#allocation5], 768  }
  0x38   :  { %2925 = vsyncadd [#allocation5], 4294966528 }
  0x39   :  { %2926 = dma.done.wait [#allocation7], 272  }
  0x3a   :  { %2927 = vsyncadd [#allocation7], 4294967024  ;;  %v2935_v1 = vmov 0.0   ;;  %vm2936_vm0 = vmmov 0   ;;  %v2937_v2 = vmov 0   ;;  %v80_v13 = vld [vmem:[%s3658_s0] sm:$0xff]  ;;  %v116_v18 = vlaneseq }
  0x3b   :  { %2526 = vmatprep.subr.bf16.mxu1 %v2935_v1  ;;  %2530 = vmatprep.mubr.msk.bf16.mxu1 %vm2936_vm0, %v2935_v1  ;;  %v3047_v3 = vld [vmem:[#allocation4 + $0x4] ss:$12 sps:$4 sm:$0xff]   ;;  %v3049_v4 = vld [vmem:[#allocation4 + $0x8] ss:$12 sps:$4 sm:$0xff]   ;;  %v3052_v5 = vld [vmem:[#allocation4] ss:$12 sps:$4 sm:$0xff]  }
  0x3c   :  { %275 = vmatprep.mubr.bf16.mxu0 %v2937_v2  ;;  %2786 = vset.pattern.permute.xlu0 %v2937_v2  ;;  %v3055_v6 = vld [vmem:[#allocation4 + $0x1c] ss:$12 sps:$4 sm:$0xff]   ;;  %v3059_v7 = vld [vmem:[#allocation4 + $0x20] ss:$12 sps:$4 sm:$0xff]   ;;  %v3061_v8 = vld [vmem:[#allocation4 + $0x18] ss:$12 sps:$4 sm:$0xff]  }
  0x3d   :  { %2787 = vset.pattern.permute.xlu1 %v2937_v2  ;;  %243 = vmatprep.subr.bf16.mxu0 %v3047_v3  ;;  %v3067_v9 = vld [vmem:[%s3663_s5 + $0x4] ss:$12 sps:$4 sm:$0xff]   ;;  %v3073_v10 = vld [vmem:[%s3663_s5 + $0x8] ss:$12 sps:$4 sm:$0xff]   ;;  %v3079_v11 = vld [vmem:[%s3663_s5] ss:$12 sps:$4 sm:$0xff]  }
  0x3e   :  { %2527 = vmatpush3.bf16.msra.mxu1 %v3049_v4  ;;  %244 = vmatpush1.bf16.msra.mxu0 %v3052_v5  ;;  %v3086_v12 = vld [vmem:[%s3663_s5 + $0x1c] ss:$12 sps:$4 sm:$0xff]   ;;  %v3097_v14 = vld [vmem:[%s3663_s5 + $0x20] ss:$12 sps:$4 sm:$0xff]   ;;  %v3103_v15 = vld [vmem:[%s3663_s5 + $0x18] ss:$12 sps:$4 sm:$0xff]  }
  0x3f   :  { %2528 = vmatprep.subr.bf16.mxu1 %v2935_v1  ;;  %245 = vmatprep.subr.bf16.mxu0 %v3055_v6  ;;  %v2938_v16 = vmov 1983009808   ;;  %v3130_v19 = vld [vmem:[%s3659_s1] ss:$0 sm:$0xff]  ;;  %v3132_v22 = vshrl.u32 %v116_v18, 7  ;;  %vm168_vm1 = vcmask 1041408  }
  0x40   :  { %85 = vperm.xlu0 %2786, %v80_v13   ;;  %v114_v17 = vunpack.c.l.s4 %v2938_v16  ;;  %v3138_v24 = vld [vmem:[%s3660_s2] ss:$0 sm:$0xff]  ;;  %vm177_vm2 = vcmask 1043456   ;;  %s2939_s2 = smov 32   ;;  %vm240_vm5 = vcmask 261120   ;;  %vm206_vm6 = vcmask 1040384  }
  0x41   :  { %v3153_v28 = vld [vmem:[%s3661_s3] ss:$0 sm:$0xff]  ;;  %vm205_vm3 = vcmp.lt.s32.totalorder %v3132_v22, 4  ;;  %vm204_vm4 = vcmp.lt.s32.totalorder %v3132_v22, 2  ;;  %vm866_vm7 = vcmask 259076   ;;  %vm2396_vm10 = vcmask 7168  }
  0x42   :  { %2529 = vmatpush3.bf16.msra.mxu1 %v3059_v7  ;;  %246 = vmatpush1.bf16.msra.mxu0 %v3061_v8  ;;  %v115_v21 = vunpack.c.0.s8 %v114_v17  ;;  %v3158_v29 = vld [vmem:[%s3662_s4] ss:$0 sm:$0xff] }
  0x43   :  { %2534 = vmatprep.subr.bf16.mxu1 %v2935_v1  ;;  %356 = vmatprep.subr.bf16.mxu0 %v3067_v9 }
  0x44   :  { %v3141_v25 = vsub.s32 %v115_v21, %v3132_v22 }
  0x45   :  { %2531 = vmatmul.mubr.bf16.vlgmr.msra.gmra.mrb[0].mxu1 %v2937_v2  ;;  %276 = vmatmul.mubr.bf16.vlgmr.msra.gmra.mrb[0].mxu0 %v2937_v2 }
  0x46   :  { %2535 = vmatpush3.bf16.msra.mxu1 %v3073_v10  ;;  %357 = vmatpush1.bf16.msra.mxu0 %v3079_v11 }
  0x47   :  { %2536 = vmatprep.subr.bf16.mxu1 %v2935_v1  ;;  %358 = vmatprep.subr.bf16.mxu0 %v3086_v12 }
  0x48   :  { %2538 = vmatprep.mubr.msk.bf16.mxu1 %vm2936_vm0, %v2935_v1  ;;  %388 = vmatprep.mubr.bf16.mxu0 %v2937_v2 }
  0x4a   :  { %2537 = vmatpush3.bf16.msra.mxu1 %v3097_v14  ;;  %359 = vmatpush1.bf16.msra.mxu0 %v3103_v15 }
  0x4b   :  { %2542 = vmatprep.subr.bf16.mxu1 %v2935_v1  ;;  %474 = vmatprep.subr.bf16.mxu0 %v3047_v3 }
  0x51   :  { %2539 = vmatmul.mubr.bf16.vlgmr.msra.gmra.mrb[0].mxu1 %v2937_v2  ;;  %389 = vmatmul.mubr.bf16.vlgmr.msra.gmra.mrb[0].mxu0 %v2937_v2 }
  0x52   :  { %2543 = vmatpush3.bf16.msra.mxu1 %v3049_v4  ;;  %475 = vmatpush1.bf16.msra.mxu0 %v3052_v5 }
  0x53   :  { %2544 = vmatprep.subr.bf16.mxu1 %v2935_v1  ;;  %476 = vmatprep.subr.bf16.mxu0 %v3055_v6 }
  0x54   :  { %506 = vmatprep.mubr.bf16.mxu0 %v2937_v2  ;;  %2546 = vmatprep.mubr.msk.bf16.mxu1 %vm2936_vm0, %v2935_v1 }
  0x56   :  { %2545 = vmatpush3.bf16.msra.mxu1 %v3059_v7  ;;  %477 = vmatpush1.bf16.msra.mxu0 %v3061_v8 }
  0x57   :  { %2550 = vmatprep.subr.bf16.mxu1 %v2935_v1  ;;  %557 = vmatprep.subr.bf16.mxu0 %v3067_v9 }
  0xbf   :  { %v86_v20 = vpop.permute.xlu0 %85 }
  0xc0   :  { %v99_v23 = vmul.f32 %v3130_v19, %v86_v20 }
  0xc2   :  { %v3144_v26 = vadd.f32 %v3138_v24, %v99_v23 }
  0xc4   :  { %v3148_v27 = vrot.slane %v3144_v26, %v3141_v25 }
  0xc6   :  { %v169_v30 = vsel %vm168_vm1, %v3148_v27, %v3153_v28  ;;  %v127_v60 = vcombine.high %v3148_v27, %v3148_v27 }
  0xc7   :  { %v178_v34 = vsel %vm177_vm2, %v169_v30, %v3158_v29 }
  0xc8   :  { %v170_v63 = vsel %vm168_vm1, %v127_v60, %v3153_v28 }
  0xc9   :  { %v179_v20 = vsel %vm177_vm2, %v170_v63, %v3158_v29 }
 0x124   :  { %v431_v31 = vpop.f32.mrb[0].mxu1  ;;  %v390_v32 = vpop.f32.mrb[0].mxu0 }
 0x125   :  { %v2540_v33 = vpop.f32.mrb[1].mxu1  ;;  %v392_v35 = vpop.f32.mrb[1].mxu0 }
 0x126   :  { %v434_v36 = vpop.f32.mrb[2].mxu1  ;;  %v437_v37 = vsel %vm205_vm3, %v392_v35, %v431_v31  ;;  %v394_v38 = vpop.f32.mrb[2].mxu0 }
 0x127   :  { %v2541_v39 = vpop.f32.mrb[3].mxu1  ;;  %v438_v40 = vsel %vm204_vm4, %v390_v32, %v437_v37  ;;  %v395_v41 = vpop.f32.mrb[3].mxu0 }
 0x128   :  { %v439_v42 = vadd.f32 %v438_v40, %v178_v34 }
 0x12a   :  { %2806 = vtanh.f32 %v439_v42 }
 0x134   :  { %v2807_v43 = vpop.eup %2806 }
 0x135   :  { %445 = vrot.lane.b32.xlu0 %v2807_v43, %s2939_s2  ;;  %v441_v44 = vmul.f32 0.5, %v2807_v43 }
 0x137   :  { %v442_v45 = vadd.f32 0.5, %v441_v44 }
 0x139   :  { %v443_v48 = vmul.f32 0.0, %v442_v45 }
 0x1a7   :  { %v446_v46 = vpop.permute.xlu0 %445 }
 0x1a8   :  { %v448_v47 = vmul.f32 %v446_v46, %v442_v45 }
 0x1aa   :  { %450 = vrot.lane.b32.xlu1 %v448_v47, %s2939_s2 }
 0x21c   :  { %v451_v49 = vpop.permute.xlu1 %450 }
 0x21d   :  { %v453_v50 = vadd.f32 %v451_v49, %v443_v48  ;;  %v112_v49 = vcombine.high %v3144_v26, %v3144_v26 }
 0x21f   :  { %2808 = vtanh.f32 %v453_v50  ;;  %v3223_v36 = vsel %vm204_vm4, %v453_v50, 0.0  ;;  %v3262_v50 = vrot.slane %v112_v49, %v3141_v25 }
 0x229   :  { %v2809_v51 = vpop.eup %2808 }
 0x22a   :  { %456 = vrot.lane.b32.xlu1 %v2809_v51, %s2939_s2 }
 0x29c   :  { %v457_v52 = vpop.permute.xlu1 %456 }
 0x29d   :  { %v459_v53 = vmul.f32 %v457_v52, %v442_v45 }
 0x29f   :  { %v3176_v54 = vsel %vm204_vm4, %v459_v53, 0.0  ;;  %v171_v53 = vsel %vm168_vm1, %v3262_v50, %v3153_v28 }
 0x2a0   :  { %v462_v55 = vpack.c.bf16 %v3176_v54, %v3176_v54 }
 0x2a2   :  { %469 = vrot.lane.b32.xlu0 %v462_v55, %s2929_s28  ;;  %v464_v56 = vrot.slane %v462_v55, 7 }
 0x2a4   :  { %465 = vrot.lane.b32.xlu1 %v464_v56, %s2929_s28 }
 0x314   :  { %v470_v57 = vpop.permute.xlu0 %469 }
 0x315   :  { %2421 = vmatmul.mubr.msk.bf16.vlgmr.msra.gmra.mrb[4].mxu0 %vm240_vm5, %v470_v57  ;;  %2547 = vmatmul.mubr.msk.bf16.vlgmr.msra.gmra.mrb[4].mxu1 %vm240_vm5, %v470_v57 }
 0x316   :  { %558 = vmatpush1.bf16.msra.mxu0 %v3079_v11  ;;  %2551 = vmatpush3.bf16.msra.mxu1 %v3073_v10  ;;  %v466_v58 = vpop.permute.xlu1 %465 }
 0x317   :  { %559 = vmatprep.subr.bf16.mxu0 %v3086_v12  ;;  %2552 = vmatprep.subr.bf16.mxu1 %v2935_v1  ;;  %v468_v59 = vsel %vm206_vm6, 0, %v466_v58 }
 0x318   :  { %589 = vmatprep.mubr.bf16.mxu0 %v2937_v2  ;;  %2554 = vmatprep.mubr.msk.bf16.mxu1 %vm2936_vm0, %v2935_v1 }
 0x31a   :  { %560 = vmatpush1.bf16.msra.mxu0 %v3103_v15  ;;  %2553 = vmatpush3.bf16.msra.mxu1 %v3097_v14 }
 0x31b   :  { %675 = vmatprep.subr.bf16.mxu0 %v3047_v3  ;;  %2558 = vmatprep.subr.bf16.mxu1 %v2935_v1 }
 0x321   :  { %2423 = vmatmul.mubr.msk.bf16.vlgmr.msra.gmra.mrb[4].mxu0 %vm240_vm5, %v468_v59  ;;  %2555 = vmatmul.mubr.msk.bf16.vlgmr.msra.gmra.mrb[4].mxu1 %vm240_vm5, %v468_v59  ;;  %v180_v59 = vsel %vm177_vm2, %v171_v53, %v3158_v29 }
 0x322   :  { %676 = vmatpush1.bf16.msra.mxu0 %v3052_v5  ;;  %2559 = vmatpush3.bf16.msra.mxu1 %v3049_v4 }
 0x323   :  { %677 = vmatprep.subr.bf16.mxu0 %v3055_v6  ;;  %2560 = vmatprep.subr.bf16.mxu1 %v2935_v1 }
 0x324   :  { %707 = vmatprep.mubr.bf16.mxu0 %v2937_v2  ;;  %2562 = vmatprep.mubr.msk.bf16.mxu1 %vm2936_vm0, %v2935_v1 }
 0x326   :  { %678 = vmatpush1.bf16.msra.mxu0 %v3061_v8  ;;  %2561 = vmatpush3.bf16.msra.mxu1 %v3059_v7 }
 0x327   :  { %758 = vmatprep.subr.bf16.mxu0 %v3067_v9  ;;  %2566 = vmatprep.subr.bf16.mxu1 %v2935_v1 }
 0x3f4   :  { %v591_v61 = vpop.f32.mrb[4].mxu0  ;;  %v632_v62 = vpop.f32.mrb[4].mxu1 }
 0x3f5   :  { %v593_v0 = vpop.f32.mrb[5].mxu0  ;;  %v2556_v13 = vpop.f32.mrb[5].mxu1 }
 0x3f6   :  { %v638_v16 = vsel %vm205_vm3, %v593_v0, %v632_v62  ;;  %v595_v17 = vpop.f32.mrb[6].mxu0  ;;  %v635_v18 = vpop.f32.mrb[6].mxu1 }
 0x3f7   :  { %v639_v21 = vsel %vm204_vm4, %v591_v61, %v638_v16  ;;  %v596_v23 = vpop.f32.mrb[7].mxu0  ;;  %v2557_v27 = vpop.f32.mrb[7].mxu1 }
 0x3f8   :  { %v640_v30 = vadd.f32 %v639_v21, %v179_v20 }
 0x3fa   :  { %2810 = vtanh.f32 %v640_v30 }
 0x404   :  { %v2811_v31 = vpop.eup %2810 }
 0x405   :  { %646 = vrot.lane.b32.xlu0 %v2811_v31, %s2939_s2  ;;  %v642_v32 = vmul.f32 0.5, %v2811_v31 }
 0x407   :  { %v643_v33 = vadd.f32 0.5, %v642_v32 }
 0x409   :  { %v644_v37 = vmul.f32 %v643_v33, %v3223_v36 }
 0x477   :  { %v647_v34 = vpop.permute.xlu0 %646 }
 0x478   :  { %v649_v35 = vmul.f32 %v647_v34, %v643_v33 }
 0x47a   :  { %651 = vrot.lane.b32.xlu1 %v649_v35, %s2939_s2 }
 0x4ec   :  { %v652_v38 = vpop.permute.xlu1 %651 }
 0x4ed   :  { %v654_v39 = vadd.f32 %v652_v38, %v644_v37  ;;  %v128_v37 = vcombine.high %v3262_v50, %v3262_v50 }
 0x4ef   :  { %2812 = vtanh.f32 %v654_v39  ;;  %v662_v18 = vsel %vm205_vm3, %v654_v39, %v3223_v36 }
 0x4f9   :  { %v2813_v40 = vpop.eup %2812 }
 0x4fa   :  { %657 = vrot.lane.b32.xlu0 %v2813_v40, %s2939_s2  ;;  %v172_v40 = vsel %vm168_vm1, %v128_v37, %v3153_v28 }
 0x56c   :  { %v658_v41 = vpop.permute.xlu0 %657 }
 0x56d   :  { %v660_v42 = vmul.f32 %v658_v41, %v643_v33 }
 0x56f   :  { %v661_v43 = vsel %vm205_vm3, %v660_v42, %v3176_v54 }
 0x570   :  { %v663_v44 = vpack.c.bf16 %v661_v43, %v661_v43 }
 0x572   :  { %670 = vrot.lane.b32.xlu1 %v663_v44, %s2929_s28  ;;  %v665_v45 = vrot.slane %v663_v44, 7 }
 0x574   :  { %666 = vrot.lane.b32.xlu0 %v665_v45, %s2929_s28 }
 0x5e4   :  { %v671_v46 = vpop.permute.xlu1 %670 }
 0x5e5   :  { %2425 = vmatmul.mubr.msk.bf16.vlgmr.msra.gmra.mrb[8].mxu0 %vm240_vm5, %v671_v46  ;;  %2563 = vmatmul.mubr.msk.bf16.vlgmr.msra.gmra.mrb[8].mxu1 %vm240_vm5, %v671_v46  ;;  %v181_v46 = vsel %vm177_vm2, %v172_v40, %v3158_v29 }
 0x5e6   :  { %759 = vmatpush1.bf16.msra.mxu0 %v3079_v11  ;;  %2567 = vmatpush3.bf16.msra.mxu1 %v3073_v10  ;;  %v667_v47 = vpop.permute.xlu0 %666 }
 0x5e7   :  { %760 = vmatprep.subr.bf16.mxu0 %v3086_v12  ;;  %2568 = vmatprep.subr.bf16.mxu1 %v2935_v1  ;;  %v669_v48 = vsel %vm206_vm6, 0, %v667_v47 }
 0x5e8   :  { %790 = vmatprep.mubr.bf16.mxu0 %v2937_v2  ;;  %2570 = vmatprep.mubr.msk.bf16.mxu1 %vm2936_vm0, %v2935_v1 }
 0x5ea   :  { %761 = vmatpush1.bf16.msra.mxu0 %v3103_v15  ;;  %2569 = vmatpush3.bf16.msra.mxu1 %v3097_v14 }
 0x5eb   :  { %880 = vmatprep.subr.bf16.mxu0 %v3047_v3  ;;  %2574 = vmatprep.subr.bf16.mxu1 %v2935_v1 }
 0x5f1   :  { %2427 = vmatmul.mubr.msk.bf16.vlgmr.msra.gmra.mrb[8].mxu0 %vm240_vm5, %v669_v48  ;;  %2571 = vmatmul.mubr.msk.bf16.vlgmr.msra.gmra.mrb[8].mxu1 %vm240_vm5, %v669_v48 }
 0x5f2   :  { %881 = vmatpush1.bf16.msra.mxu0 %v3052_v5  ;;  %2575 = vmatpush3.bf16.msra.mxu1 %v3049_v4 }
 0x5f3   :  { %882 = vmatprep.subr.bf16.mxu0 %v3055_v6  ;;  %2576 = vmatprep.subr.bf16.mxu1 %v2935_v1 }
 0x5f4   :  { %912 = vmatprep.mubr.bf16.mxu0 %v2937_v2  ;;  %2578 = vmatprep.mubr.msk.bf16.mxu1 %vm2936_vm0, %v2935_v1 }
 0x5f6   :  { %883 = vmatpush1.bf16.msra.mxu0 %v3061_v8  ;;  %2577 = vmatpush3.bf16.msra.mxu1 %v3059_v7 }
 0x5f7   :  { %963 = vmatprep.subr.bf16.mxu0 %v3067_v9  ;;  %2582 = vmatprep.subr.bf16.mxu1 %v2935_v1 }
 0x6c4   :  { %v792_v51 = vpop.f32.mrb[8].mxu0  ;;  %v833_v52 = vpop.f32.mrb[8].mxu1 }
 0x6c5   :  { %v794_v54 = vpop.f32.mrb[9].mxu0  ;;  %v2572_v55 = vpop.f32.mrb[9].mxu1 }
 0x6c6   :  { %v839_v56 = vsel %vm205_vm3, %v794_v54, %v833_v52  ;;  %v796_v57 = vpop.f32.mrb[10].mxu0  ;;  %v836_v58 = vpop.f32.mrb[10].mxu1 }
 0x6c7   :  { %v840_v26 = vsel %vm204_vm4, %v792_v51, %v839_v56  ;;  %v797_v60 = vpop.f32.mrb[11].mxu0  ;;  %v2573_v61 = vpop.f32.mrb[11].mxu1 }
 0x6c8   :  { %v841_v62 = vadd.f32 %v840_v26, %v180_v59 }
 0x6ca   :  { %2814 = vtanh.f32 %v841_v62 }
 0x6d4   :  { %v2815_v63 = vpop.eup %2814 }
 0x6d5   :  { %847 = vrot.lane.b32.xlu1 %v2815_v63, %s2939_s2  ;;  %v843_v0 = vmul.f32 0.5, %v2815_v63  ;;  %v81_v63 = vld [vmem:[%s3658_s0 + $0x8] sm:$0xff] }
 0x6d7   :  { %v844_v13 = vadd.f32 0.5, %v843_v0 }
 0x6d9   :  { %v845_v20 = vmul.f32 %v844_v13, %v662_v18 }
 0x747   :  { %v848_v16 = vpop.permute.xlu1 %847 }
 0x748   :  { %v850_v17 = vmul.f32 %v848_v16, %v844_v13 }
 0x74a   :  { %852 = vrot.lane.b32.xlu0 %v850_v17, %s2939_s2 }
 0x7bc   :  { %v853_v21 = vpop.permute.xlu0 %852 }
 0x7bd   :  { %v855_v23 = vadd.f32 %v853_v21, %v845_v20 }
 0x7bf   :  { %2816 = vtanh.f32 %v855_v23 }
 0x7c9   :  { %v2817_v27 = vpop.eup %2816 }
 0x7ca   :  { %858 = vrot.lane.b32.xlu1 %v2817_v27, %s2939_s2 }
 0x83c   :  { %v859_v30 = vpop.permute.xlu1 %858 }
 0x83d   :  { %v3279_v31 = vmul.f32 %v859_v30, %v844_v13 }
 0x83f   :  { %v868_v32 = vpack.c.bf16 %v3279_v31, %v3279_v31 }
 0x841   :  { %875 = vrot.lane.b32.xlu0 %v868_v32, %s2929_s28  ;;  %v870_v33 = vrot.slane %v868_v32, 7 }
 0x843   :  { %871 = vrot.lane.b32.xlu1 %v870_v33, %s2929_s28 }
 0x8b3   :  { %v876_v34 = vpop.permute.xlu0 %875 }
 0x8b4   :  { %2429 = vmatmul.mubr.msk.bf16.vlgmr.msra.gmra.mrb[12].mxu0 %vm240_vm5, %v876_v34  ;;  %2579 = vmatmul.mubr.msk.bf16.vlgmr.msra.gmra.mrb[12].mxu1 %vm240_vm5, %v876_v34 }
 0x8b5   :  { %964 = vmatpush1.bf16.msra.mxu0 %v3079_v11  ;;  %2583 = vmatpush3.bf16.msra.mxu1 %v3073_v10  ;;  %v872_v35 = vpop.permute.xlu1 %871 }
 0x8b6   :  { %965 = vmatprep.subr.bf16.mxu0 %v3086_v12  ;;  %2584 = vmatprep.subr.bf16.mxu1 %v2935_v1  ;;  %v874_v36 = vsel %vm206_vm6, 0, %v872_v35 }
 0x8b7   :  { %995 = vmatprep.mubr.bf16.mxu0 %v2937_v2  ;;  %2586 = vmatprep.mubr.msk.bf16.mxu1 %vm2936_vm0, %v2935_v1 }
 0x8b9   :  { %966 = vmatpush1.bf16.msra.mxu0 %v3103_v15  ;;  %2585 = vmatpush3.bf16.msra.mxu1 %v3097_v14 }
 0x8ba   :  { %1084 = vmatprep.subr.bf16.mxu0 %v3047_v3  ;;  %2590 = vmatprep.subr.bf16.mxu1 %v2935_v1 }
 0x8c0   :  { %2431 = vmatmul.mubr.msk.bf16.vlgmr.msra.gmra.mrb[12].mxu0 %vm240_vm5, %v874_v36  ;;  %2587 = vmatmul.mubr.msk.bf16.vlgmr.msra.gmra.mrb[12].mxu1 %vm240_vm5, %v874_v36 }
 0x8c1   :  { %1085 = vmatpush1.bf16.msra.mxu0 %v3052_v5  ;;  %2591 = vmatpush3.bf16.msra.mxu1 %v3049_v4 }
 0x8c2   :  { %1086 = vmatprep.subr.bf16.mxu0 %v3055_v6  ;;  %2592 = vmatprep.subr.bf16.mxu1 %v2935_v1 }
 0x8c3   :  { %1116 = vmatprep.mubr.bf16.mxu0 %v2937_v2  ;;  %2594 = vmatprep.mubr.msk.bf16.mxu1 %vm2936_vm0, %v2935_v1 }
 0x8c5   :  { %1087 = vmatpush1.bf16.msra.mxu0 %v3061_v8  ;;  %2593 = vmatpush3.bf16.msra.mxu1 %v3059_v7 }
 0x8c6   :  { %1167 = vmatprep.subr.bf16.mxu0 %v3067_v9  ;;  %2598 = vmatprep.subr.bf16.mxu1 %v2935_v1 }
 0x993   :  { %v997_v38 = vpop.f32.mrb[12].mxu0  ;;  %v1038_v39 = vpop.f32.mrb[12].mxu1 }
 0x994   :  { %v999_v41 = vpop.f32.mrb[13].mxu0  ;;  %v2588_v42 = vpop.f32.mrb[13].mxu1 }
 0x995   :  { %v1044_v43 = vsel %vm205_vm3, %v999_v41, %v1038_v39  ;;  %v1001_v44 = vpop.f32.mrb[14].mxu0  ;;  %v1041_v45 = vpop.f32.mrb[14].mxu1 }
 0x996   :  { %v1045_v47 = vsel %vm204_vm4, %v997_v38, %v1044_v43  ;;  %v1002_v48 = vpop.f32.mrb[15].mxu0  ;;  %v2589_v49 = vpop.f32.mrb[15].mxu1 }
 0x997   :  { %v1046_v50 = vadd.f32 %v1045_v47, %v181_v46 }
 0x999   :  { %2818 = vtanh.f32 %v1046_v50 }
 0x9a3   :  { %v2819_v51 = vpop.eup %2818 }
 0x9a4   :  { %1052 = vrot.lane.b32.xlu0 %v2819_v51, %s2939_s2  ;;  %v1048_v52 = vmul.f32 0.5, %v2819_v51 }
 0x9a6   :  { %v1049_v53 = vadd.f32 0.5, %v1048_v52 }
 0x9a8   :  { %v1050_v56 = vmul.f32 %v1049_v53, %v855_v23 }
 0xa16   :  { %v1053_v54 = vpop.permute.xlu0 %1052 }
 0xa17   :  { %v1055_v55 = vmul.f32 %v1053_v54, %v1049_v53 }
 0xa19   :  { %1057 = vrot.lane.b32.xlu1 %v1055_v55, %s2939_s2 }
 0xa8b   :  { %v1058_v57 = vpop.permute.xlu1 %1057 }
 0xa8c   :  { %v3324_v58 = vadd.f32 %v1058_v57, %v1050_v56 }
 0xa8e   :  { %2820 = vtanh.f32 %v3324_v58 }
 0xa98   :  { %v2821_v59 = vpop.eup %2820 }
 0xa99   :  { %1063 = vrot.lane.b32.xlu0 %v2821_v59, %s2939_s2 }
 0xb0b   :  { %v1064_v26 = vpop.permute.xlu0 %1063 }
 0xb0c   :  { %v3328_v60 = vmul.f32 %v1064_v26, %v1049_v53 }
 0xb0e   :  { %v1072_v61 = vpack.c.bf16 %v3328_v60, %v3328_v60 }
 0xb10   :  { %1079 = vrot.lane.b32.xlu1 %v1072_v61, %s2929_s28  ;;  %v1074_v62 = vrot.slane %v1072_v61, 7 }
 0xb12   :  { %1075 = vrot.lane.b32.xlu0 %v1074_v62, %s2929_s28 }
 0xb14   :  { %90 = vperm.xlu1 %2787, %v81_v63  }
 0xb82   :  { %v1080_v0 = vpop.permute.xlu1 %1079 }
 0xb83   :  { %2433 = vmatmul.mubr.msk.bf16.vlgmr.msra.gmra.mrb[16].mxu0 %vm240_vm5, %v1080_v0  ;;  %2595 = vmatmul.mubr.msk.bf16.vlgmr.msra.gmra.mrb[16].mxu1 %vm240_vm5, %v1080_v0 }
 0xb84   :  { %1168 = vmatpush1.bf16.msra.mxu0 %v3079_v11  ;;  %2599 = vmatpush3.bf16.msra.mxu1 %v3073_v10  ;;  %v1076_v13 = vpop.permute.xlu0 %1075 }
 0xb85   :  { %1169 = vmatprep.subr.bf16.mxu0 %v3086_v12  ;;  %2600 = vmatprep.subr.bf16.mxu1 %v2935_v1  ;;  %v1078_v16 = vsel %vm206_vm6, 0, %v1076_v13 }
 0xb86   :  { %1199 = vmatprep.mubr.bf16.mxu0 %v2937_v2  ;;  %2602 = vmatprep.mubr.msk.bf16.mxu1 %vm2936_vm0, %v2935_v1 }
 0xb88   :  { %1170 = vmatpush1.bf16.msra.mxu0 %v3103_v15  ;;  %2601 = vmatpush3.bf16.msra.mxu1 %v3097_v14 }
 0xb89   :  { %1288 = vmatprep.subr.bf16.mxu0 %v3047_v3  ;;  %2606 = vmatprep.subr.bf16.mxu1 %v2935_v1 }
 0xb8f   :  { %2435 = vmatmul.mubr.msk.bf16.vlgmr.msra.gmra.mrb[16].mxu0 %vm240_vm5, %v1078_v16  ;;  %2603 = vmatmul.mubr.msk.bf16.vlgmr.msra.gmra.mrb[16].mxu1 %vm240_vm5, %v1078_v16 }
 0xb90   :  { %1289 = vmatpush1.bf16.msra.mxu0 %v3052_v5  ;;  %2607 = vmatpush3.bf16.msra.mxu1 %v3049_v4 }
 0xb91   :  { %1290 = vmatprep.subr.bf16.mxu0 %v3055_v6  ;;  %2608 = vmatprep.subr.bf16.mxu1 %v2935_v1 }
 0xb92   :  { %1320 = vmatprep.mubr.bf16.mxu0 %v2937_v2  ;;  %2610 = vmatprep.mubr.msk.bf16.mxu1 %vm2936_vm0, %v2935_v1 }
 0xb93   :  { %v91_v17 = vpop.permute.xlu1 %90 }
 0xb94   :  { %1291 = vmatpush1.bf16.msra.mxu0 %v3061_v8  ;;  %2609 = vmatpush3.bf16.msra.mxu1 %v3059_v7  ;;  %v100_v18 = vmul.f32 %v3130_v19, %v91_v17 }
 0xb95   :  { %1371 = vmatprep.subr.bf16.mxu0 %v3067_v9  ;;  %2614 = vmatprep.subr.bf16.mxu1 %v2935_v1 }
 0xb96   :  { %v3366_v20 = vadd.f32 %v3138_v24, %v100_v18 }
 0xb98   :  { %v3370_v21 = vrot.slane %v3366_v20, %v3141_v25 }
 0xb9a   :  { %v173_v23 = vsel %vm168_vm1, %v3370_v21, %v3153_v28  ;;  %v144_v56 = vcombine.high %v3370_v21, %v3370_v21 }
 0xb9b   :  { %v182_v32 = vsel %vm177_vm2, %v173_v23, %v3158_v29 }
 0xb9c   :  { %v174_v59 = vsel %vm168_vm1, %v144_v56, %v3153_v28 }
 0xb9d   :  { %v183_v13 = vsel %vm177_vm2, %v174_v59, %v3158_v29 }
 0xc62   :  { %v1201_v27 = vpop.f32.mrb[16].mxu0  ;;  %v1242_v30 = vpop.f32.mrb[16].mxu1 }
 0xc63   :  { %v1203_v33 = vpop.f32.mrb[17].mxu0  ;;  %v2604_v34 = vpop.f32.mrb[17].mxu1 }
 0xc64   :  { %v1248_v19 = vsel %vm205_vm3, %v1203_v33, %v1242_v30  ;;  %v1205_v24 = vpop.f32.mrb[18].mxu0  ;;  %v1245_v35 = vpop.f32.mrb[18].mxu1 }
 0xc65   :  { %v1249_v36 = vsel %vm204_vm4, %v1201_v27, %v1248_v19  ;;  %v1206_v37 = vpop.f32.mrb[19].mxu0  ;;  %v2605_v38 = vpop.f32.mrb[19].mxu1 }
 0xc66   :  { %v1250_v39 = vadd.f32 %v1249_v36, %v182_v32 }
 0xc68   :  { %2822 = vtanh.f32 %v1250_v39 }
 0xc72   :  { %v2823_v40 = vpop.eup %2822 }
 0xc73   :  { %1256 = vrot.lane.b32.xlu0 %v2823_v40, %s2939_s2  ;;  %v1252_v41 = vmul.f32 0.5, %v2823_v40 }
 0xc75   :  { %v1253_v42 = vadd.f32 0.5, %v1252_v41 }
 0xc77   :  { %v1254_v45 = vmul.f32 %v1253_v42, %v3324_v58 }
 0xce5   :  { %v1257_v43 = vpop.permute.xlu0 %1256 }
 0xce6   :  { %v1259_v44 = vmul.f32 %v1257_v43, %v1253_v42  ;;  %v129_v43 = vcombine.high %v3366_v20, %v3366_v20 }
 0xce8   :  { %1261 = vrot.lane.b32.xlu1 %v1259_v44, %s2939_s2  ;;  %v3467_v44 = vrot.slane %v129_v43, %v3141_v25 }
 0xd5a   :  { %v1262_v46 = vpop.permute.xlu1 %1261 }
 0xd5b   :  { %v1264_v47 = vadd.f32 %v1262_v46, %v1254_v45 }
 0xd5d   :  { %2824 = vtanh.f32 %v1264_v47 }
 0xd67   :  { %v2825_v48 = vpop.eup %2824 }
 0xd68   :  { %1267 = vrot.lane.b32.xlu0 %v2825_v48, %s2939_s2 }
 0xdda   :  { %v1268_v49 = vpop.permute.xlu0 %1267 }
 0xddb   :  { %v3385_v50 = vmul.f32 %v1268_v49, %v1253_v42 }
 0xddd   :  { %v1276_v51 = vpack.c.bf16 %v3385_v50, %v3385_v50 }
 0xddf   :  { %1283 = vrot.lane.b32.xlu1 %v1276_v51, %s2929_s28  ;;  %v1278_v52 = vrot.slane %v1276_v51, 7 }
 0xde1   :  { %1279 = vrot.lane.b32.xlu0 %v1278_v52, %s2929_s28 }
 0xe51   :  { %v1284_v53 = vpop.permute.xlu1 %1283 }
 0xe52   :  { %2437 = vmatmul.mubr.msk.bf16.vlgmr.msra.gmra.mrb[20].mxu0 %vm240_vm5, %v1284_v53  ;;  %2611 = vmatmul.mubr.msk.bf16.vlgmr.msra.gmra.mrb[20].mxu1 %vm240_vm5, %v1284_v53 }
 0xe53   :  { %1372 = vmatpush1.bf16.msra.mxu0 %v3079_v11  ;;  %2615 = vmatpush3.bf16.msra.mxu1 %v3073_v10  ;;  %v1280_v54 = vpop.permute.xlu0 %1279 }
 0xe54   :  { %1373 = vmatprep.subr.bf16.mxu0 %v3086_v12  ;;  %2616 = vmatprep.subr.bf16.mxu1 %v2935_v1  ;;  %v1282_v55 = vsel %vm206_vm6, 0, %v1280_v54 }
 0xe55   :  { %1403 = vmatprep.mubr.bf16.mxu0 %v2937_v2  ;;  %2618 = vmatprep.mubr.msk.bf16.mxu1 %vm2936_vm0, %v2935_v1 }
 0xe57   :  { %1374 = vmatpush1.bf16.msra.mxu0 %v3103_v15  ;;  %2617 = vmatpush3.bf16.msra.mxu1 %v3097_v14 }
 0xe58   :  { %1492 = vmatprep.subr.bf16.mxu0 %v3047_v3  ;;  %2622 = vmatprep.subr.bf16.mxu1 %v2935_v1 }
 0xe5e   :  { %2439 = vmatmul.mubr.msk.bf16.vlgmr.msra.gmra.mrb[20].mxu0 %vm240_vm5, %v1282_v55  ;;  %2619 = vmatmul.mubr.msk.bf16.vlgmr.msra.gmra.mrb[20].mxu1 %vm240_vm5, %v1282_v55 }
 0xe5f   :  { %1493 = vmatpush1.bf16.msra.mxu0 %v3052_v5  ;;  %2623 = vmatpush3.bf16.msra.mxu1 %v3049_v4 }
 0xe60   :  { %1494 = vmatprep.subr.bf16.mxu0 %v3055_v6  ;;  %2624 = vmatprep.subr.bf16.mxu1 %v2935_v1 }
 0xe61   :  { %1524 = vmatprep.mubr.bf16.mxu0 %v2937_v2  ;;  %2626 = vmatprep.mubr.msk.bf16.mxu1 %vm2936_vm0, %v2935_v1 }
 0xe63   :  { %1495 = vmatpush1.bf16.msra.mxu0 %v3061_v8  ;;  %2625 = vmatpush3.bf16.msra.mxu1 %v3059_v7 }
 0xe64   :  { %1575 = vmatprep.subr.bf16.mxu0 %v3067_v9  ;;  %2630 = vmatprep.subr.bf16.mxu1 %v2935_v1 }
 0xf31   :  { %v1405_v57 = vpop.f32.mrb[20].mxu0  ;;  %v1446_v58 = vpop.f32.mrb[20].mxu1 }
 0xf32   :  { %v1407_v26 = vpop.f32.mrb[21].mxu0  ;;  %v2620_v61 = vpop.f32.mrb[21].mxu1 }
 0xf33   :  { %v1452_v62 = vsel %vm205_vm3, %v1407_v26, %v1446_v58  ;;  %v1409_v63 = vpop.f32.mrb[22].mxu0  ;;  %v1449_v0 = vpop.f32.mrb[22].mxu1 }
 0xf34   :  { %v1453_v16 = vsel %vm204_vm4, %v1405_v57, %v1452_v62  ;;  %v1410_v17 = vpop.f32.mrb[23].mxu0  ;;  %v2621_v18 = vpop.f32.mrb[23].mxu1 }
 0xf35   :  { %v1454_v21 = vadd.f32 %v1453_v16, %v183_v13 }
 0xf37   :  { %2826 = vtanh.f32 %v1454_v21 }
 0xf41   :  { %v2827_v23 = vpop.eup %2826 }
 0xf42   :  { %1460 = vrot.lane.b32.xlu1 %v2827_v23, %s2939_s2  ;;  %v1456_v27 = vmul.f32 0.5, %v2827_v23 }
 0xf44   :  { %v1457_v30 = vadd.f32 0.5, %v1456_v27 }
 0xf46   :  { %v1458_v34 = vmul.f32 %v1457_v30, %v1264_v47  ;;  %v175_v47 = vsel %vm168_vm1, %v3467_v44, %v3153_v28 }
 0xf47   :  { %v184_v54 = vsel %vm177_vm2, %v175_v47, %v3158_v29  ;;  %v3556_v47 = vld [vmem:[%s3663_s5 + $0x1c] ss:$12 sps:$4 sm:$0xff]  }
 0xfb4   :  { %v1461_v32 = vpop.permute.xlu1 %1460 }
 0xfb5   :  { %v1463_v33 = vmul.f32 %v1461_v32, %v1457_v30 }
 0xfb7   :  { %1465 = vrot.lane.b32.xlu0 %v1463_v33, %s2939_s2 }
0x1029   :  { %v1466_v19 = vpop.permute.xlu0 %1465 }
0x102a   :  { %v1468_v24 = vadd.f32 %v1466_v19, %v1458_v34 }
0x102c   :  { %2828 = vtanh.f32 %v1468_v24 }
0x1036   :  { %v2829_v35 = vpop.eup %2828 }
0x1037   :  { %1471 = vrot.lane.b32.xlu1 %v2829_v35, %s2939_s2 }
0x10a9   :  { %v1472_v36 = vpop.permute.xlu1 %1471 }
0x10aa   :  { %v3431_v37 = vmul.f32 %v1472_v36, %v1457_v30 }
0x10ac   :  { %v1480_v38 = vpack.c.bf16 %v3431_v37, %v3431_v37 }
0x10ae   :  { %1487 = vrot.lane.b32.xlu0 %v1480_v38, %s2929_s28  ;;  %v1482_v39 = vrot.slane %v1480_v38, 7 }
0x10b0   :  { %1483 = vrot.lane.b32.xlu1 %v1482_v39, %s2929_s28 }
0x1120   :  { %v1488_v40 = vpop.permute.xlu0 %1487 }
0x1121   :  { %2441 = vmatmul.mubr.msk.bf16.vlgmr.msra.gmra.mrb[24].mxu0 %vm240_vm5, %v1488_v40  ;;  %2627 = vmatmul.mubr.msk.bf16.vlgmr.msra.gmra.mrb[24].mxu1 %vm240_vm5, %v1488_v40 }
0x1122   :  { %1576 = vmatpush1.bf16.msra.mxu0 %v3079_v11  ;;  %2631 = vmatpush3.bf16.msra.mxu1 %v3073_v10  ;;  %v1484_v41 = vpop.permute.xlu1 %1483 }
0x1123   :  { %1577 = vmatprep.subr.bf16.mxu0 %v3086_v12  ;;  %2632 = vmatprep.subr.bf16.mxu1 %v2935_v1  ;;  %v1486_v42 = vsel %vm206_vm6, 0, %v1484_v41 }
0x1124   :  { %1607 = vmatprep.mubr.bf16.mxu0 %v2937_v2  ;;  %2634 = vmatprep.mubr.msk.bf16.mxu1 %vm2936_vm0, %v2935_v1 }
0x1126   :  { %1578 = vmatpush1.bf16.msra.mxu0 %v3103_v15  ;;  %2633 = vmatpush3.bf16.msra.mxu1 %v3097_v14 }
0x1127   :  { %1696 = vmatprep.subr.bf16.mxu0 %v3047_v3  ;;  %2638 = vmatprep.subr.bf16.mxu1 %v2935_v1 }
0x112d   :  { %2443 = vmatmul.mubr.msk.bf16.vlgmr.msra.gmra.mrb[24].mxu0 %vm240_vm5, %v1486_v42  ;;  %2635 = vmatmul.mubr.msk.bf16.vlgmr.msra.gmra.mrb[24].mxu1 %vm240_vm5, %v1486_v42 }
0x112e   :  { %1697 = vmatpush1.bf16.msra.mxu0 %v3052_v5  ;;  %2639 = vmatpush3.bf16.msra.mxu1 %v3049_v4 }
0x112f   :  { %1698 = vmatprep.subr.bf16.mxu0 %v3055_v6  ;;  %2640 = vmatprep.subr.bf16.mxu1 %v2935_v1 }
0x1130   :  { %1728 = vmatprep.mubr.bf16.mxu0 %v2937_v2  ;;  %2642 = vmatprep.mubr.msk.bf16.mxu1 %vm2936_vm0, %v2935_v1 }
0x1132   :  { %1699 = vmatpush1.bf16.msra.mxu0 %v3061_v8  ;;  %2641 = vmatpush3.bf16.msra.mxu1 %v3059_v7 }
0x1133   :  { %1779 = vmatprep.subr.bf16.mxu0 %v3067_v9  ;;  %2646 = vmatprep.subr.bf16.mxu1 %v2935_v1 }
0x1200   :  { %v1609_v45 = vpop.f32.mrb[24].mxu0  ;;  %v1650_v46 = vpop.f32.mrb[24].mxu1 }
0x1201   :  { %v1611_v48 = vpop.f32.mrb[25].mxu0  ;;  %v2636_v49 = vpop.f32.mrb[25].mxu1 }
0x1202   :  { %v1656_v51 = vsel %vm205_vm3, %v1611_v48, %v1650_v46  ;;  %v1613_v52 = vpop.f32.mrb[26].mxu0  ;;  %v1653_v53 = vpop.f32.mrb[26].mxu1  ;;  %v3550_v46 = vld [vmem:[%s3663_s5 + $0x8] ss:$12 sps:$4 sm:$0xff]   ;;  %v3566_v48 = vld [vmem:[%s3663_s5 + $0x18] ss:$12 sps:$4 sm:$0xff]  }
0x1203   :  { %v1657_v25 = vsel %vm204_vm4, %v1609_v45, %v1656_v51  ;;  %v1614_v20 = vpop.f32.mrb[27].mxu0  ;;  %v2637_v55 = vpop.f32.mrb[27].mxu1  ;;  %v3544_v45 = vld [vmem:[%s3663_s5] ss:$12 sps:$4 sm:$0xff]  }
0x1204   :  { %v1658_v56 = vadd.f32 %v1657_v25, %v184_v54  ;;  %v3572_v49 = vld [vmem:[%s3663_s5 + $0x20] ss:$12 sps:$4 sm:$0xff]   ;;  %v2853_v25 = vld [vmem:[#allocation4 + $0x8] ss:$12 sps:$4 sm:$0xff]  }
0x1205   :  { %v2851_v51 = vld [vmem:[#allocation4 + $0x4] ss:$12 sps:$4 sm:$0xff]   ;;  %v2852_v54 = vld [vmem:[#allocation4] ss:$12 sps:$4 sm:$0xff]   ;;  %v2854_v20 = vld [vmem:[#allocation4 + $0x1c] ss:$12 sps:$4 sm:$0xff]  }
0x1206   :  { %2830 = vtanh.f32 %v1658_v56  ;;  %v2855_v55 = vld [vmem:[#allocation4 + $0x18] ss:$12 sps:$4 sm:$0xff]   ;;  %v2856_v56 = vld [vmem:[#allocation4 + $0x20] ss:$12 sps:$4 sm:$0xff]  }
0x1210   :  { %v2831_v57 = vpop.eup %2830 }
0x1211   :  { %1664 = vrot.lane.b32.xlu0 %v2831_v57, %s2939_s2  ;;  %v1660_v58 = vmul.f32 0.5, %v2831_v57  ;;  %v2857_v57 = vld [vmem:[%s3663_s5 + $0x4] ss:$12 sps:$4 sm:$0xff]  }
0x1213   :  { %v1661_v59 = vadd.f32 0.5, %v1660_v58 }
0x1215   :  { %v1662_v62 = vmul.f32 %v1661_v59, %v1468_v24 }
0x1283   :  { %v1665_v26 = vpop.permute.xlu0 %1664 }
0x1284   :  { %v1667_v61 = vmul.f32 %v1665_v26, %v1661_v59 }
0x1286   :  { %1669 = vrot.lane.b32.xlu1 %v1667_v61, %s2939_s2 }
0x12f8   :  { %v1670_v63 = vpop.permute.xlu1 %1669 }
0x12f9   :  { %v1672_v0 = vadd.f32 %v1670_v63, %v1662_v62 }
0x12fb   :  { %2832 = vtanh.f32 %v1672_v0 }
0x1305   :  { %v2833_v13 = vpop.eup %2832 }
0x1306   :  { %1675 = vrot.lane.b32.xlu0 %v2833_v13, %s2939_s2 }
0x1378   :  { %v1676_v16 = vpop.permute.xlu0 %1675 }
0x1379   :  { %v3481_v17 = vmul.f32 %v1676_v16, %v1661_v59 }
0x137b   :  { %v1684_v18 = vpack.c.bf16 %v3481_v17, %v3481_v17 }
0x137d   :  { %1691 = vrot.lane.b32.xlu1 %v1684_v18, %s2929_s28  ;;  %v1686_v21 = vrot.slane %v1684_v18, 7 }
0x137f   :  { %1687 = vrot.lane.b32.xlu0 %v1686_v21, %s2929_s28 }
0x13ef   :  { %v1692_v23 = vpop.permute.xlu1 %1691 }
0x13f0   :  { %2445 = vmatmul.mubr.msk.bf16.vlgmr.msra.gmra.mrb[28].mxu0 %vm240_vm5, %v1692_v23  ;;  %2643 = vmatmul.mubr.msk.bf16.vlgmr.msra.gmra.mrb[28].mxu1 %vm240_vm5, %v1692_v23 }
0x13f1   :  { %1780 = vmatpush1.bf16.msra.mxu0 %v3079_v11  ;;  %2647 = vmatpush3.bf16.msra.mxu1 %v3073_v10  ;;  %v1688_v11 = vpop.permute.xlu0 %1687 }
0x13f2   :  { %1781 = vmatprep.subr.bf16.mxu0 %v3086_v12  ;;  %2648 = vmatprep.subr.bf16.mxu1 %v2935_v1  ;;  %v1690_v10 = vsel %vm206_vm6, 0, %v1688_v11 }
0x13f3   :  { %1811 = vmatprep.mubr.bf16.mxu0 %v2937_v2  ;;  %2650 = vmatprep.mubr.msk.bf16.mxu1 %vm2936_vm0, %v2935_v1 }
0x13f5   :  { %1782 = vmatpush1.bf16.msra.mxu0 %v3103_v15  ;;  %2649 = vmatpush3.bf16.msra.mxu1 %v3097_v14 }
0x13f6   :  { %1900 = vmatprep.subr.bf16.mxu0 %v3047_v3  ;;  %2654 = vmatprep.subr.bf16.mxu1 %v2935_v1  ;;  %v145_v3 = vcombine.high %v3467_v44, %v3467_v44 }
0x13fc   :  { %2447 = vmatmul.mubr.msk.bf16.vlgmr.msra.gmra.mrb[28].mxu0 %vm240_vm5, %v1690_v10  ;;  %2651 = vmatmul.mubr.msk.bf16.vlgmr.msra.gmra.mrb[28].mxu1 %vm240_vm5, %v1690_v10 }
0x13fd   :  { %1901 = vmatpush1.bf16.msra.mxu0 %v3052_v5  ;;  %2655 = vmatpush3.bf16.msra.mxu1 %v3049_v4 }
0x13fe   :  { %1902 = vmatprep.subr.bf16.mxu0 %v3055_v6  ;;  %2656 = vmatprep.subr.bf16.mxu1 %v2935_v1  ;;  %v176_v6 = vsel %vm168_vm1, %v145_v3, %v3153_v28 }
0x13ff   :  { %1932 = vmatprep.mubr.bf16.mxu0 %v2937_v2  ;;  %2658 = vmatprep.mubr.msk.bf16.mxu1 %vm2936_vm0, %v2935_v1 }
0x1401   :  { %1903 = vmatpush1.bf16.msra.mxu0 %v3061_v8  ;;  %2657 = vmatpush3.bf16.msra.mxu1 %v3059_v7  ;;  %v3522_v7 = vsel %vm177_vm2, %v176_v6, %v3158_v29 }
0x1402   :  { %1983 = vmatprep.subr.bf16.mxu0 %v3067_v9  ;;  %2662 = vmatprep.subr.bf16.mxu1 %v2935_v1 }
0x14cf   :  { %v1813_v4 = vpop.f32.mrb[28].mxu0  ;;  %v1854_v5 = vpop.f32.mrb[28].mxu1 }
0x14d0   :  { %v1815_v12 = vpop.f32.mrb[29].mxu0  ;;  %v2652_v14 = vpop.f32.mrb[29].mxu1 }
0x14d1   :  { %v1860_v15 = vsel %vm205_vm3, %v1815_v12, %v1854_v5  ;;  %v1817_v8 = vpop.f32.mrb[30].mxu0  ;;  %v1857_v27 = vpop.f32.mrb[30].mxu1 }
0x14d2   :  { %v1861_v9 = vsel %vm204_vm4, %v1813_v4, %v1860_v15  ;;  %v1818_v30 = vpop.f32.mrb[31].mxu0  ;;  %v2653_v32 = vpop.f32.mrb[31].mxu1 }
0x14d3   :  { %v1862_v33 = vadd.f32 %v1861_v9, %v3522_v7 }
0x14d5   :  { %2834 = vtanh.f32 %v1862_v33 }
0x14df   :  { %v2835_v28 = vpop.eup %2834 }
0x14e0   :  { %1868 = vrot.lane.b32.xlu1 %v2835_v28, %s2939_s2  ;;  %v1864_v34 = vmul.f32 0.5, %v2835_v28 }
0x14e2   :  { %v1865_v19 = vadd.f32 0.5, %v1864_v34 }
0x14e4   :  { %v1866_v36 = vmul.f32 %v1865_v19, %v1672_v0 }
0x1552   :  { %v1869_v24 = vpop.permute.xlu1 %1868 }
0x1553   :  { %v1871_v35 = vmul.f32 %v1869_v24, %v1865_v19 }
0x1555   :  { %1873 = vrot.lane.b32.xlu0 %v1871_v35, %s2939_s2 }
0x15c7   :  { %v1874_v29 = vpop.permute.xlu0 %1873 }
0x15c8   :  { %v3529_v38 = vadd.f32 %v1874_v29, %v1866_v36 }
0x15ca   :  { %2836 = vtanh.f32 %v3529_v38 }
0x15d4   :  { %v2837_v39 = vpop.eup %2836 }
0x15d5   :  { %1879 = vrot.lane.b32.xlu1 %v2837_v39, %s2939_s2 }
0x1647   :  { %v1880_v40 = vpop.permute.xlu1 %1879 }
0x1648   :  { %v3533_v41 = vmul.f32 %v1880_v40, %v1865_v19 }
0x164a   :  { %v1888_v42 = vpack.c.bf16 %v3533_v41, %v3533_v41 }
0x164c   :  { %1895 = vrot.lane.b32.xlu0 %v1888_v42, %s2929_s28  ;;  %v1890_v43 = vrot.slane %v1888_v42, 7 }
0x164e   :  { %1891 = vrot.lane.b32.xlu1 %v1890_v43, %s2929_s28 }
0x16be   :  { %v1896_v44 = vpop.permute.xlu0 %1895 }
0x16bf   :  { %2449 = vmatmul.mubr.msk.bf16.vlgmr.msra.gmra.mrb[32].mxu0 %vm240_vm5, %v1896_v44  ;;  %2659 = vmatmul.mubr.msk.bf16.vlgmr.msra.gmra.mrb[32].mxu1 %vm240_vm5, %v1896_v44 }
0x16c0   :  { %1984 = vmatpush1.bf16.msra.mxu0 %v3544_v45  ;;  %2663 = vmatpush3.bf16.msra.mxu1 %v3550_v46  ;;  %v1892_v52 = vpop.permute.xlu1 %1891 }
0x16c1   :  { %1985 = vmatprep.subr.bf16.mxu0 %v3556_v47  ;;  %2664 = vmatprep.subr.bf16.mxu1 %v2935_v1  ;;  %v1894_v53 = vsel %vm206_vm6, 0, %v1892_v52  ;;  %v2805_v52 = vld [vmem:[#allocation6 + $0x8] sm:$0xff]  }
0x16c2   :  { %2015 = vmatprep.mubr.bf16.mxu0 %v2937_v2  ;;  %2666 = vmatprep.mubr.msk.bf16.mxu1 %vm2936_vm0, %v2935_v1 }
0x16c4   :  { %1986 = vmatpush1.bf16.msra.mxu0 %v3566_v48  ;;  %2665 = vmatpush3.bf16.msra.mxu1 %v3572_v49 }
0x16c5   :  { %2104 = vmatprep.subr.bf16.mxu0 %v2851_v51  ;;  %2670 = vmatprep.subr.bf16.mxu1 %v2935_v1 }
0x16cb   :  { %2451 = vmatmul.mubr.msk.bf16.vlgmr.msra.gmra.mrb[32].mxu0 %vm240_vm5, %v1894_v53  ;;  %2667 = vmatmul.mubr.msk.bf16.vlgmr.msra.gmra.mrb[32].mxu1 %vm240_vm5, %v1894_v53 }
0x16cc   :  { %2105 = vmatpush1.bf16.msra.mxu0 %v2852_v54  ;;  %2671 = vmatpush3.bf16.msra.mxu1 %v2853_v25 }
0x16cd   :  { %2106 = vmatprep.subr.bf16.mxu0 %v2854_v20  ;;  %2672 = vmatprep.subr.bf16.mxu1 %v2935_v1 }
0x16ce   :  { %2136 = vmatprep.mubr.bf16.mxu0 %v2937_v2  ;;  %2674 = vmatprep.mubr.msk.bf16.mxu1 %vm2936_vm0, %v2935_v1 }
0x16d0   :  { %2107 = vmatpush1.bf16.msra.mxu0 %v2855_v55  ;;  %2673 = vmatpush3.bf16.msra.mxu1 %v2856_v56  ;;  %v2457_v56 = vld [vmem:[%s3666_s8] ss:$0 sm:$0xff] }
0x16d1   :  { %2187 = vmatprep.subr.bf16.mxu0 %v2857_v57  ;;  %2678 = vmatprep.subr.bf16.mxu1 %v2935_v1 }
0x179e   :  { %v2017_v58 = vpop.f32.mrb[32].mxu0  ;;  %v2058_v59 = vpop.f32.mrb[32].mxu1 }
0x179f   :  { %v2019_v26 = vpop.f32.mrb[33].mxu0  ;;  %v2668_v61 = vpop.f32.mrb[33].mxu1 }
0x17a0   :  { %v2064_v62 = vsel %vm205_vm3, %v2019_v26, %v2058_v59  ;;  %v2021_v63 = vpop.f32.mrb[34].mxu0  ;;  %v2061_v0 = vpop.f32.mrb[34].mxu1 }
0x17a1   :  { %v2065_v13 = vsel %vm204_vm4, %v2017_v58, %v2064_v62  ;;  %v2022_v16 = vpop.f32.mrb[35].mxu0  ;;  %v2669_v18 = vpop.f32.mrb[35].mxu1  ;;  %v2461_v0 = vld [vmem:[#allocation8] ss:$0 sm:$0xff] }
0x17a2   :  { %v2066_v21 = vadd.f32 %v2065_v13, %v3522_v7 }
0x17a4   :  { %2838 = vtanh.f32 %v2066_v21 }
0x17ae   :  { %v2839_v23 = vpop.eup %2838 }
0x17af   :  { %2072 = vrot.lane.b32.xlu0 %v2839_v23, %s2939_s2  ;;  %v2068_v11 = vmul.f32 0.5, %v2839_v23 }
0x17b1   :  { %v2069_v10 = vadd.f32 0.5, %v2068_v11 }
0x17b3   :  { %v2070_v5 = vmul.f32 %v2069_v10, %v3529_v38 }
0x1821   :  { %v2073_v3 = vpop.permute.xlu0 %2072 }
0x1822   :  { %v2075_v4 = vmul.f32 %v2073_v3, %v2069_v10  ;;  %v2462_v3 = vld [vmem:[#allocation3] ss:$0 sm:$0xff] }
0x1824   :  { %2077 = vrot.lane.b32.xlu1 %v2075_v4, %s2939_s2 }
0x1896   :  { %v2078_v6 = vpop.permute.xlu1 %2077 }
0x1897   :  { %v2080_v12 = vadd.f32 %v2078_v6, %v2070_v5 }
0x1899   :  { %2840 = vtanh.f32 %v2080_v12 }
0x18a3   :  { %v2841_v14 = vpop.eup %2840 }
0x18a4   :  { %2083 = vrot.lane.b32.xlu0 %v2841_v14, %s2939_s2 }
0x1916   :  { %v2084_v15 = vpop.permute.xlu0 %2083 }
0x1917   :  { %v2086_v8 = vmul.f32 %v2084_v15, %v2069_v10 }
0x1919   :  { %v2092_v27 = vpack.c.bf16 %v2086_v8, %v2086_v8 }
0x191b   :  { %2099 = vrot.lane.b32.xlu1 %v2092_v27, %s2929_s28  ;;  %v2094_v9 = vrot.slane %v2092_v27, 7 }
0x191d   :  { %2095 = vrot.lane.b32.xlu0 %v2094_v9, %s2929_s28 }
0x198d   :  { %v2100_v30 = vpop.permute.xlu1 %2099 }
0x198e   :  { %2453 = vmatmul.mubr.msk.bf16.vlgmr.msra.gmra.mrb[36].mxu0 %vm240_vm5, %v2100_v30  ;;  %2675 = vmatmul.mubr.msk.bf16.vlgmr.msra.gmra.mrb[36].mxu1 %vm240_vm5, %v2100_v30 }
0x198f   :  { %2188 = vmatpush1.bf16.msra.mxu0 %v3544_v45  ;;  %2679 = vmatpush3.bf16.msra.mxu1 %v3550_v46  ;;  %v2096_v32 = vpop.permute.xlu0 %2095 }
0x1990   :  { %2189 = vmatprep.subr.bf16.mxu0 %v3556_v47  ;;  %2680 = vmatprep.subr.bf16.mxu1 %v2935_v1  ;;  %v2098_v33 = vsel %vm206_vm6, 0, %v2096_v32 }
0x1991   :  { %2219 = vmatprep.mubr.bf16.mxu0 %v2937_v2  ;;  %2682 = vmatprep.mubr.msk.bf16.mxu1 %vm2936_vm0, %v2935_v1 }
0x1993   :  { %2190 = vmatpush1.bf16.msra.mxu0 %v3566_v48  ;;  %2681 = vmatpush3.bf16.msra.mxu1 %v3572_v49 }
0x1994   :  { %2686 = vmatprep.subr.bf16.mxu0 %v2935_v1 }
0x199a   :  { %2455 = vmatmul.mubr.msk.bf16.vlgmr.msra.gmra.mrb[36].mxu0 %vm240_vm5, %v2098_v33  ;;  %2683 = vmatmul.mubr.msk.bf16.vlgmr.msra.gmra.mrb[36].mxu1 %vm240_vm5, %v2098_v33 }
0x199b   :  { %2690 = vmatprep.mubr.msk.bf16.mxu0 %vm2936_vm0, %v2935_v1 }
0x1a6d   :  { %v2221_v2 = vpop.f32.mrb[36].mxu0  ;;  %v2262_v28 = vpop.f32.mrb[36].mxu1 }
0x1a6e   :  { %v2223_v34 = vpop.f32.mrb[37].mxu0  ;;  %v2684_v19 = vpop.f32.mrb[37].mxu1 }
0x1a6f   :  { %v2268_v24 = vsel %vm205_vm3, %v2223_v34, %v2262_v28  ;;  %v2225_v35 = vpop.f32.mrb[38].mxu0  ;;  %v2265_v36 = vpop.f32.mrb[38].mxu1 }
0x1a70   :  { %v2269_v29 = vsel %vm204_vm4, %v2221_v2, %v2268_v24  ;;  %v2226_v38 = vpop.f32.mrb[39].mxu0  ;;  %v2685_v39 = vpop.f32.mrb[39].mxu1 }
0x1a71   :  { %v2270_v40 = vadd.f32 %v2269_v29, %v3522_v7 }
0x1a73   :  { %2842 = vtanh.f32 %v2270_v40 }
0x1a7d   :  { %v2843_v42 = vpop.eup %2842 }
0x1a7e   :  { %2276 = vrot.lane.b32.xlu1 %v2843_v42, %s2939_s2  ;;  %v2272_v43 = vmul.f32 0.5, %v2843_v42 }
0x1a80   :  { %v2273_v44 = vadd.f32 0.5, %v2272_v43 }
0x1a82   :  { %v2274_v22 = vmul.f32 %v2273_v44, %v2080_v12 }
0x1af0   :  { %v2277_v45 = vpop.permute.xlu1 %2276 }
0x1af1   :  { %v2279_v46 = vmul.f32 %v2277_v45, %v2273_v44 }
0x1af3   :  { %2281 = vrot.lane.b32.xlu0 %v2279_v46, %s2939_s2 }
0x1af7   :  { %863 = vrot.lane.b32.xlu0 %v3279_v31, %s2929_s28 }
0x1afb   :  { %1272 = vrot.lane.b32.xlu0 %v3385_v50, %s2929_s28 }
0x1aff   :  { %1680 = vrot.lane.b32.xlu0 %v3481_v17, %s2929_s28  ;;  %v2804_v17 = vld [vmem:[#allocation6] sm:$0xff]  }
0x1b00   :  { %2687 = vmatpush3.bf16.msra.mxu0 %v2804_v17 }
0x1b01   :  { %2688 = vmatprep.subr.bf16.mxu0 %v2935_v1 }
0x1b03   :  { %2088 = vrot.lane.b32.xlu0 %v2086_v8, %s2929_s28 }
0x1b04   :  { %2689 = vmatpush3.bf16.msra.mxu0 %v2805_v52 }
0x1b65   :  { %v2282_v7 = vpop.permute.xlu0 %2281 }
0x1b66   :  { %v2284_v47 = vadd.f32 %v2282_v7, %v2274_v22 }
0x1b68   :  { %2844 = vtanh.f32 %v2284_v47 }
0x1b69   :  { %v864_v48 = vpop.permute.xlu0 %863 }
0x1b6a   :  { %867 = vst.msk [vmem:[#allocation2 - $0x4] sm:$0x30] %vm866_vm7, %v864_v48 }
0x1b6d   :  { %v1273_v49 = vpop.permute.xlu0 %1272 }
0x1b6e   :  { %1275 = vst.msk [vmem:[#allocation2] sm:$0x30] %vm866_vm7, %v1273_v49 }
0x1b71   :  { %v1681_v31 = vpop.permute.xlu0 %1680 }
0x1b72   :  { %v2845_v51 = vpop.eup %2844  ;;  %1683 = vst.msk [vmem:[#allocation2 + $0x4] sm:$0x30] %vm866_vm7, %v1681_v31 }
0x1b73   :  { %2287 = vrot.lane.b32.xlu1 %v2845_v51, %s2939_s2 }
0x1b75   :  { %v2089_v50 = vpop.permute.xlu0 %2088 }
0x1b76   :  { %2091 = vst.msk [vmem:[#allocation2 + $0x8] sm:$0x30] %vm866_vm7, %v2089_v50 }
0x1b77   :  { %1068 = vrot.lane.b32.xlu1 %v3328_v60, %s2929_s28 }
0x1b7b   :  { %1476 = vrot.lane.b32.xlu1 %v3431_v37, %s2929_s28 }
0x1b7f   :  { %1884 = vrot.lane.b32.xlu1 %v3533_v41, %s2929_s28 }
0x1be5   :  { %v2288_v53 = vpop.permute.xlu1 %2287 }
0x1be6   :  { %v2290_v54 = vmul.f32 %v2288_v53, %v2273_v44 }
0x1be8   :  { %2292 = vrot.lane.b32.xlu1 %v2290_v54, %s2929_s28 }
0x1be9   :  { %v1069_v25 = vpop.permute.xlu1 %1068 }
0x1bea   :  { %1071 = vst.msk [vmem:[#allocation2 - $0x2] sm:$0x30] %vm866_vm7, %v1069_v25 }
0x1bed   :  { %v1477_v60 = vpop.permute.xlu1 %1476 }
0x1bee   :  { %1479 = vst.msk [vmem:[#allocation2 + $0x2] sm:$0x30] %vm866_vm7, %v1477_v60 }
0x1bf1   :  { %v1885_v37 = vpop.permute.xlu1 %1884 }
0x1bf2   :  { %1887 = vst.msk [vmem:[#allocation2 + $0x6] sm:$0x30] %vm866_vm7, %v1885_v37 }
0x1bf5   :  { %v2296_v20 = vld [vmem:[#allocation2] sm:$0xff] }
0x1c5a   :  { %v2293_v41 = vpop.permute.xlu1 %2292 }
0x1c5b   :  { %2295 = vst.msk [vmem:[#allocation2 + $0xa] sm:$0x30] %vm866_vm7, %v2293_v41 }
0x1c62   :  { %v2297_v55 = vld [vmem:[#allocation2 + $0x8] sm:$0xff] }
0x1c63   :  { %v2298_v1 = vpack.c.bf16 %v2297_v55, %v2296_v20 }
0x1c65   :  { %2691 = vmatmul.mubr.msk.bf16.vlgmr.msra.gmra.mrb[40].mxu0 %vm240_vm5, %v2298_v1 }
0x1d38   :  { %v2359_v57 = vpop.f32.mrb[40].mxu0 }
0x1d39   :  { %v2360_v58 = vadd.f32 %v2457_v56, %v2359_v57  ;;  %v2692_v59 = vpop.f32.mrb[41].mxu0 }
0x1d3a   :  { %v2362_v26 = vpop.f32.mrb[42].mxu0 }
0x1d3b   :  { %vm2366_vm8 = vcmp.ge.f32.partialorder %v2360_v58, 0.0  ;;  %v2368_v61 = vmul.f32 0.01, %v2360_v58  ;;  %v2363_v62 = vadd.f32 %v2457_v56, %v2362_v26  ;;  %v2693_v63 = vpop.f32.mrb[43].mxu0 }
0x1d3d   :  { %vm2367_vm9 = vcmp.ge.f32.partialorder %v2363_v62, 0.0  ;;  %v2369_v13 = vmul.f32 0.01, %v2363_v62  ;;  %v2370_v16 = vsel %vm2366_vm8, %v2360_v58, %v2368_v61 }
0x1d3e   :  { %v2379_v18 = vmul.f32 %v2461_v0, %v2370_v16 }
0x1d3f   :  { %v2371_v21 = vsel %vm2367_vm9, %v2363_v62, %v2369_v13 }
0x1d40   :  { %v2381_v23 = vsel %vm240_vm5, %v2379_v18, 0.0  ;;  %v2380_v11 = vmul.f32 %v2461_v0, %v2371_v21 }
0x1d41   :  { %2382 = vadd.xlane.f32.xlu0 %v2381_v23 }
0x1d42   :  { %v2384_v10 = vsel %vm240_vm5, %v2380_v11, 0.0 }
0x1d43   :  { %2385 = vadd.xlane.f32.xlu1 %v2384_v10 }
0x1dce   :  { %v2383_v4 = vpop.xlane.xlu0 %2382 }
0x1dcf   :  { %v2394_v5 = vadd.f32 %v2462_v3, %v2383_v4 }
0x1dd0   :  { %v2386_v6 = vpop.xlane.xlu1 %2385 }
0x1dd1   :  { %2397 = vst.msk [vmem:[%s3669_s11] sm:$0xff] %vm2396_vm10, %v2394_v5  ;;  %v2395_v12 = vadd.f32 %v2462_v3, %v2386_v6 }
0x1dd3   :  { %2398 = vst.msk [vmem:[%s3669_s11 + $0x8] sm:$0xff] %vm2396_vm10, %v2395_v12 }
0x1dd4   :  { %2403 = vsyncpa [#allocation5], 1 }
0x1dd5   :  { %2404 = vsyncpa [#allocation7], 1 }

</bundles_post_ra>
